<compile_context>
chip_gen: v6e
topology: v6e:2x2x1
jax: 0.10.0
libtpu: 0.0.40
codegen_flags: <defaults>
</compile_context>

<pallas_src>
import functools

import jax
import jax.numpy as jnp
from jax import lax
from jax.experimental import pallas as pl
from jax.experimental.pallas import tpu as pltpu


def _round_up(x, m):
    return ((x + m - 1) // m) * m


def _padded_bytes(shape, itemsize):
    """VMEM footprint of an array, accounting for native (8,128) tiling."""
    if len(shape) == 0:
        return 4
    if len(shape) == 1:
        return _round_up(shape[0], 128) * itemsize
    sub = 8 * max(1, 4 // itemsize)         # 8 f32 / 16 bf16 / 32 int8 sublanes
    dims = list(shape)
    dims[-1] = _round_up(dims[-1], 128)
    dims[-2] = _round_up(dims[-2], sub)
    total = 1
    for d in dims:
        total *= d
    return total * itemsize


def _vmem_budget():
    """Per-call VMEM budget with headroom (~48 MiB on v7x, ~96 MiB on v5e/v6e)."""
    cap = 64 * 1024 * 1024
    try:
        cap = int(pltpu.get_tpu_info().vmem_capacity_bytes)
    except Exception:  # best-effort hardware query
        pass
    return max(32 * 1024 * 1024, min(3 * cap // 4, 96 * 1024 * 1024))


def _pick_tiles(h2, w2, bk, e, np_, x_dtype, w_dtype, budget, batch_first,
                target_rows=512):
    """Pick divisor tiles (th2, tw2) of (h/2, w/2) under a VMEM byte budget.

    Prefers the largest row tile (<= target_rows, >= 4 grid steps so both v7x
    TensorCores pipeline); ties broken toward wide tw2 (more contiguous DMA).
    Falls back to the smallest tile if nothing satisfies the constraints.
    """
    in_isz = jnp.dtype(x_dtype).itemsize
    w_isz = jnp.dtype(w_dtype).itemsize

    h_divs = [d for d in range(1, h2 + 1) if h2 % d == 0]
    if batch_first:
        # Output block is (B, th2, tw2, Np): tw2 must be a multiple of 8
        # (sublane) or the full w/2 extent.
        w_divs = [d for d in range(1, w2 + 1)
                  if w2 % d == 0 and (d % 8 == 0 or d == w2)]
    else:
        w_divs = [d for d in range(1, w2 + 1) if w2 % d == 0]

    wgt = _padded_bytes((4 * e, np_), w_isz)       # single-buffered weight

    def tile_bytes(th2, tw2):
        rows = th2 * tw2 * bk
        if batch_first:
            slab = _padded_bytes((bk, th2, 2, tw2, 2 * e), in_isz)
            outb = _padded_bytes((bk, th2, tw2, np_), in_isz)
        else:
            slab = _padded_bytes((th2, 2, tw2, 2, bk, e), in_isz)
            outb = _padded_bytes((th2, tw2, bk, np_), in_isz)
        tmp = (_padded_bytes((rows, e), 4) + _padded_bytes((rows, e), 2)
               + 2 * _padded_bytes((rows, np_), 4))
        return 2 * slab + 2 * outb + wgt + tmp     # in/out double-buffered

    min_steps = min(4, h2 * w2)
    best_key, best = None, None
    small_bytes, small = None, None
    for th2 in h_divs:
        for tw2 in w_divs:
            rows = th2 * tw2 * bk
            steps = (h2 // th2) * (w2 // tw2)
            bts = tile_bytes(th2, tw2)
            if small_bytes is None or bts < small_bytes:
                small_bytes, small = bts, (th2, tw2)
            if rows <= target_rows and bts <= budget and steps >= min_steps:
                key = (rows, tw2)
                if best_key is None or key > best_key:
                    best_key, best = key, (th2, tw2)
    th2, tw2 = best if best is not None else small
    return th2, tw2, tile_bytes(th2, tw2)


# ---------------------------------------------------------------------------
# Kernel: fused 2x2 patch gather + LayerNorm (folded) + Linear.
# ---------------------------------------------------------------------------
def _patch_merge_kernel(x_ref, w_ref, b_ref, o_ref, *, eps, batch_first):
    out_block = o_ref.shape                 # (th2, tw2, B, Np) or (B, th2, tw2, Np)
    rows = out_block[0] * out_block[1] * out_block[2]
    np_ = out_block[3]

    if batch_first:
        # x_ref: (B, th2, 2, tw2, 2E); features of piece (wp, hp) live at lane
        # range [wp*E, (wp+1)*E) of the hp-th h-parity slice.
        e = x_ref.shape[-1] // 2

        def piece(wp, hp):                  # -> (B, th2, tw2, E)
            return x_ref[:, :, hp, :, wp * e:(wp + 1) * e]
    else:
        # x_ref: (th2, 2, tw2, 2, B, E); parity dims are leading -> cheap slices.
        e = x_ref.shape[-1]

        def piece(wp, hp):                  # -> (th2, tw2, B, E)
            return x_ref[:, hp, :, wp, :, :]

    # Feature order along the merged 4E axis is (w_parity, h_parity, E).
    order = ((0, 0), (0, 1), (1, 0), (1, 1))

    # Pass 1: single-pass LayerNorm statistics over the merged 4E features,
    # accumulated piece by piece (no lane concat, no rows x 4E temporaries).
    s = jnp.zeros((rows, 1), jnp.float32)
    ss = jnp.zeros((rows, 1), jnp.float32)
    for wp, hp in order:
        p = piece(wp, hp).astype(jnp.float32).reshape(rows, e)
        s = s + jnp.sum(p, axis=-1, keepdims=True)
        ss = ss + jnp.sum(p * p, axis=-1, keepdims=True)
    inv_k = 1.0 / (4.0 * e)
    mean = s * inv_k
    var = jnp.maximum(ss * inv_k - mean * mean, 0.0)   # biased var (PyTorch LN)
    inv_std = lax.rsqrt(var + eps)

    # Pass 2: normalize each piece, cast to the MXU dtype, and accumulate four
    # matmuls against the matching (E, Np) rows of the gamma-folded weight.
    acc = jnp.zeros((rows, np_), jnp.float32)
    for idx, (wp, hp) in enumerate(order):
        p = piece(wp, hp).astype(jnp.float32).reshape(rows, e)
        y = ((p - mean) * inv_std).astype(w_ref.dtype)
        acc = acc + jnp.dot(y, w_ref[idx * e:(idx + 1) * e, :],
                            preferred_element_type=jnp.float32)
    acc = acc + b_ref[...].astype(jnp.float32)          # folded beta @ W^T
    o_ref[...] = acc.reshape(out_block).astype(o_ref.dtype)


def _weight_spec(k, np_, single_buffer):
    if single_buffer:
        # Constant block index across the grid -> a single VMEM buffer suffices.
        return pl.BlockSpec((k, np_), lambda i, j: (0, 0),
                            pipeline_mode=pl.Buffered(1))
    return pl.BlockSpec((k, np_), lambda i, j: (0, 0))


def _call_fused(x_view, w_pad, b_pad, *, eps, th2, tw2, batch_first,
                vmem_limit, out_dtype, single_buffer_weight):
    k, np_ = w_pad.shape
    if batch_first:
        b, h2, _, w2, _ = x_view.shape
        in_spec = pl.BlockSpec((b, th2, 2, tw2, 2 * (k // 4)),
                               lambda i, j: (0, i, 0, j, 0))
        out_shape = jax.ShapeDtypeStruct((b, h2, w2, np_), out_dtype)
        out_spec = pl.BlockSpec((b, th2, tw2, np_), lambda i, j: (0, i, j, 0))
    else:
        h2, _, w2, _, b, _ = x_view.shape
        in_spec = pl.BlockSpec((th2, 2, tw2, 2, b, k // 4),
                               lambda i, j: (i, 0, j, 0, 0, 0))
        out_shape = jax.ShapeDtypeStruct((h2, w2, b, np_), out_dtype)
        out_spec = pl.BlockSpec((th2, tw2, b, np_), lambda i, j: (i, j, 0, 0))

    kernel = functools.partial(_patch_merge_kernel, eps=eps,
                               batch_first=batch_first)
    return pl.pallas_call(
        kernel,
        out_shape=out_shape,
        grid_spec=pltpu.PrefetchScalarGridSpec(
            num_scalar_prefetch=0,
            grid=(h2 // th2, w2 // tw2),
            in_specs=[
                in_spec,
                _weight_spec(k, np_, single_buffer_weight),
                pl.BlockSpec((1, np_), lambda i, j: (0, 0)),
            ],
            out_specs=out_spec,
        ),
        compiler_params=pltpu.CompilerParams(
            dimension_semantics=("parallel", "parallel"),
            vmem_limit_bytes=int(vmem_limit)),
    )(x_view, w_pad, b_pad)


# ---------------------------------------------------------------------------
# Public wrapper
# ---------------------------------------------------------------------------
def patch_merge(x, ln_weight, ln_bias, lin_weight, *, height, width, eps=1e-5,
                batch_first=False, compute_dtype=jnp.bfloat16,
                single_buffer_weight=True, target_rows=512):
    """PatchMerge forward.

    x          : (L, B, E) if not batch_first else (B, L, E), L = height*width.
                 Pass bf16 activations to halve HBM traffic (LN math stays f32).
    ln_weight  : (4E,)   LayerNorm gamma
    ln_bias    : (4E,)   LayerNorm beta
    lin_weight : (N, 4E) nn.Linear weight (bias=False)
    """
    h, w = int(height), int(width)
    assert h % 2 == 0 and w % 2 == 0
    h2, w2 = h // 2, w // 2
    if batch_first:
        b, l, e = x.shape
    else:
        l, b, e = x.shape
    assert l == h * w
    k = 4 * e
    n = lin_weight.shape[0]
    assert lin_weight.shape == (n, k)
    assert ln_weight.shape == (k,) and ln_bias.shape == (k,)
    np_ = _round_up(n, 128)                 # lane-dense output (no masked vst)

    # Fold the LayerNorm affine into the linear (once, in f32):
    #   LN(x) @ W^T = x_hat @ (gamma[:,None] * W^T) + beta @ W^T
    w_f32 = lin_weight.T.astype(jnp.float32)                      # (K, N)
    w_pad = jnp.pad(ln_weight.astype(jnp.float32)[:, None] * w_f32,
                    ((0, 0), (0, np_ - n))).astype(compute_dtype)  # (K, Np)
    b_pad = jnp.pad(ln_bias.astype(jnp.float32)[None, :] @ w_f32,
                    ((0, 0), (0, np_ - n))).astype(jnp.float32)    # (1, Np)

    out_dtype = x.dtype
    budget = _vmem_budget()

    if batch_first:
        bk = b
        x_view = x.reshape(b, h2, 2, w2, 2 * e)       # free view of (B, L, E)
    else:
        # Pad the batch to a sublane multiple so the in-kernel row flatten is
        # layout-trivial; padded rows are finite (zeros) and sliced off below.
        bk = _round_up(b, 8)
        xp = x if bk == b else jnp.pad(x, ((0, 0), (0, bk - b), (0, 0)))
        x_view = xp.reshape(h2, 2, w2, 2, bk, e)      # free view of (L, B, E)

    th2, tw2, est = _pick_tiles(h2, w2, bk, e, np_, x.dtype, compute_dtype,
                                budget, batch_first, target_rows=target_rows)
    vmem_limit = min(max(budget, est + (8 << 20)), 128 * 1024 * 1024)

    # TODO(synk): add a third grid axis over batch for extremely large B*E so
    # even a (1, 1) spatial tile stays within the VMEM budget.
    out = _call_fused(x_view, w_pad, b_pad, eps=eps, th2=th2, tw2=tw2,
                      batch_first=batch_first, vmem_limit=vmem_limit,
                      out_dtype=out_dtype,
                      single_buffer_weight=single_buffer_weight)

    if batch_first:
        out = out.reshape(b, h2 * w2, np_)
        return out[..., :n] if np_ != n else out
    out = out.reshape(h2 * w2, bk, np_)
    if bk != b or np_ != n:
        out = out[:, :b, :n]
    return out


# ---------------------------------------------------------------------------
# Pure-JAX reference (mirrors the PyTorch module)
# ---------------------------------------------------------------------------
def _reference(x, ln_weight, ln_bias, lin_weight, *, height, width, eps,
               batch_first=False):
    h2, w2 = height // 2, width // 2
    if batch_first:
        b, _, e = x.shape
        xr = x.reshape(b, h2, 2, w2, 2, e).transpose(0, 1, 3, 4, 2, 5)
        m = xr.reshape(b, h2 * w2, 4 * e)
    else:
        _, b, e = x.shape
        xr = x.reshape(h2, 2, w2, 2, b, e).transpose(0, 2, 4, 3, 1, 5)
        m = xr.reshape(h2 * w2, b, 4 * e)
    mu = jnp.mean(m, axis=-1, keepdims=True)
    var = jnp.mean((m - mu) ** 2, axis=-1, keepdims=True)
    y = (m - mu) / jnp.sqrt(var + eps) * ln_weight + ln_bias
    return y @ lin_weight.T


if __name__ == "__main__":
    key = jax.random.PRNGKey(0)

    def _params(pkey, embed_dim, out_channels):
        kg, kb, kw = jax.random.split(pkey, 3)
        kk = 4 * embed_dim
        ln_w = 1.0 + 0.1 * jax.random.normal(kg, (kk,), jnp.float32)
        ln_b = 0.1 * jax.random.normal(kb, (kk,), jnp.float32)
        lin_w = jax.random.normal(kw, (out_channels, kk), jnp.float32) / jnp.sqrt(kk)
        return ln_w, ln_b, lin_w

    def _check(out, ref, shape):
        assert out.shape == shape, out.shape
        # bf16 matmul operands -> loose tolerance vs the f32 reference.
        err = float(jnp.max(jnp.abs(out.astype(jnp.float32) - ref)))
        assert jnp.allclose(out.astype(jnp.float32), ref,
                            atol=5e-2, rtol=5e-2), err

    # Case 1: seq-first layout, aligned batch.
    H, W, B, E, N = 16, 16, 8, 8, 16
    k1, k2, key = jax.random.split(key, 3)
    x = jax.random.normal(k1, (H * W, B, E), jnp.float32)
    ln_w, ln_b, lin_w = _params(k2, E, N)
    out = jax.block_until_ready(
        patch_merge(x, ln_w, ln_b, lin_w, height=H, width=W, eps=1e-5))
    ref = _reference(x, ln_w, ln_b, lin_w, height=H, width=W, eps=1e-5)
    _check(out, ref, ((H // 2) * (W // 2), B, N))

    # Case 2: batch-first layout (fused path, no XLA transpose round trip).
    H, W, B, E, N = 16, 16, 8, 8, 16
    k1, k2, key = jax.random.split(key, 3)
    x = jax.random.normal(k1, (B, H * W, E), jnp.float32)
    ln_w, ln_b, lin_w = _params(k2, E, N)
    out = jax.block_until_ready(
        patch_merge(x, ln_w, ln_b, lin_w, height=H, width=W, eps=1e-5,
                    batch_first=True))
    ref = _reference(x, ln_w, ln_b, lin_w, height=H, width=W, eps=1e-5,
                     batch_first=True)
    _check(out, ref, (B, (H // 2) * (W // 2), N))

    # Case 3: seq-first, batch not a multiple of 8 and N not a multiple of 128
    # (exercises the batch padding and the lane-dense output slice).
    H, W, B, E, N = 8, 8, 2, 16, 24
    k1, k2, key = jax.random.split(key, 3)
    x = jax.random.normal(k1, (H * W, B, E), jnp.float32)
    ln_w, ln_b, lin_w = _params(k2, E, N)
    out = jax.block_until_ready(
        patch_merge(x, ln_w, ln_b, lin_w, height=H, width=W, eps=1e-5))
    ref = _reference(x, ln_w, ln_b, lin_w, height=H, width=W, eps=1e-5)
    _check(out, ref, ((H // 2) * (W // 2), B, N))

    print("KERNEL_OK")
</pallas_src>

<mosaic_0001>
module attributes {stable_mosaic.version = 11 : i64} {
  func.func @_patch_merge_kernel(%arg0: i32, %arg1: i32, %arg2: memref<2x2x8x2x8x8xf32, #tpu.memory_space<vmem>>, %arg3: memref<32x128xbf16, #tpu.memory_space<vmem>>, %arg4: memref<1x128xf32, #tpu.memory_space<vmem>>, %arg5: memref<2x8x8x128xf32, #tpu.memory_space<vmem>>) attributes {dimension_semantics = [#tpu.dimension_semantics<parallel>, #tpu.dimension_semantics<parallel>], iteration_bounds = array<i64: 4, 1>, scalar_prefetch = 0 : i64, scratch_operands = 0 : i64, tpu.core_type = #tpu.core_type<tc>, window_params = [{transform_indices = @transform_0, window_bounds = array<i64: 2, 2, 8, 2, 8, 8>}, {pipeline_mode = #tpu.pipeline_mode<synchronous>, transform_indices = @transform_1, window_bounds = array<i64: 32, 128>}, {pipeline_mode = #tpu.pipeline_mode<synchronous>, transform_indices = @transform_2, window_bounds = array<i64: 1, 128>}, {transform_indices = @transform_3, window_bounds = array<i64: 2, 8, 8, 128>}]} {
    %cst = arith.constant 0.000000e+00 : f32
    %0 = vector.broadcast %cst : f32 to vector<128x1xf32>
    %cst_0 = arith.constant 0.000000e+00 : f32
    %1 = vector.broadcast %cst_0 : f32 to vector<128x1xf32>
    %c0 = arith.constant 0 : index
    %c0_1 = arith.constant 0 : index
    %c0_2 = arith.constant 0 : index
    %c0_3 = arith.constant 0 : index
    %c0_4 = arith.constant 0 : index
    %c0_5 = arith.constant 0 : index
    %2 = vector.load %arg2[%c0, %c0_1, %c0_2, %c0_3, %c0_4, %c0_5] : memref<2x2x8x2x8x8xf32, #tpu.memory_space<vmem>>, vector<2x1x8x1x8x8xf32>
    %3 = vector.shape_cast %2 : vector<2x1x8x1x8x8xf32> to vector<2x8x8x8xf32>
    %4 = vector.shape_cast %3 : vector<2x8x8x8xf32> to vector<128x8xf32>
    %cst_6 = arith.constant dense<0.000000e+00> : vector<128xf32>
    %5 = vector.multi_reduction <add>, %4, %cst_6 [1] : vector<128x8xf32> to vector<128xf32>
    %6 = vector.shape_cast %5 : vector<128xf32> to vector<128x1xf32>
    %7 = arith.addf %0, %6 : vector<128x1xf32>
    %8 = arith.mulf %4, %4 : vector<128x8xf32>
    %cst_7 = arith.constant dense<0.000000e+00> : vector<128xf32>
    %9 = vector.multi_reduction <add>, %8, %cst_7 [1] : vector<128x8xf32> to vector<128xf32>
    %10 = vector.shape_cast %9 : vector<128xf32> to vector<128x1xf32>
    %11 = arith.addf %1, %10 : vector<128x1xf32>
    %c0_8 = arith.constant 0 : index
    %c1 = arith.constant 1 : index
    %c0_9 = arith.constant 0 : index
    %c0_10 = arith.constant 0 : index
    %c0_11 = arith.constant 0 : index
    %c0_12 = arith.constant 0 : index
    %12 = vector.load %arg2[%c0_8, %c1, %c0_9, %c0_10, %c0_11, %c0_12] : memref<2x2x8x2x8x8xf32, #tpu.memory_space<vmem>>, vector<2x1x8x1x8x8xf32>
    %13 = vector.shape_cast %12 : vector<2x1x8x1x8x8xf32> to vector<2x8x8x8xf32>
    %14 = vector.shape_cast %13 : vector<2x8x8x8xf32> to vector<128x8xf32>
    %cst_13 = arith.constant dense<0.000000e+00> : vector<128xf32>
    %15 = vector.multi_reduction <add>, %14, %cst_13 [1] : vector<128x8xf32> to vector<128xf32>
    %16 = vector.shape_cast %15 : vector<128xf32> to vector<128x1xf32>
    %17 = arith.addf %7, %16 : vector<128x1xf32>
    %18 = arith.mulf %14, %14 : vector<128x8xf32>
    %cst_14 = arith.constant dense<0.000000e+00> : vector<128xf32>
    %19 = vector.multi_reduction <add>, %18, %cst_14 [1] : vector<128x8xf32> to vector<128xf32>
    %20 = vector.shape_cast %19 : vector<128xf32> to vector<128x1xf32>
    %21 = arith.addf %11, %20 : vector<128x1xf32>
    %c0_15 = arith.constant 0 : index
    %c0_16 = arith.constant 0 : index
    %c0_17 = arith.constant 0 : index
    %c1_18 = arith.constant 1 : index
    %c0_19 = arith.constant 0 : index
    %c0_20 = arith.constant 0 : index
    %22 = vector.load %arg2[%c0_15, %c0_16, %c0_17, %c1_18, %c0_19, %c0_20] : memref<2x2x8x2x8x8xf32, #tpu.memory_space<vmem>>, vector<2x1x8x1x8x8xf32>
    %23 = vector.shape_cast %22 : vector<2x1x8x1x8x8xf32> to vector<2x8x8x8xf32>
    %24 = vector.shape_cast %23 : vector<2x8x8x8xf32> to vector<128x8xf32>
    %cst_21 = arith.constant dense<0.000000e+00> : vector<128xf32>
    %25 = vector.multi_reduction <add>, %24, %cst_21 [1] : vector<128x8xf32> to vector<128xf32>
    %26 = vector.shape_cast %25 : vector<128xf32> to vector<128x1xf32>
    %27 = arith.addf %17, %26 : vector<128x1xf32>
    %28 = arith.mulf %24, %24 : vector<128x8xf32>
    %cst_22 = arith.constant dense<0.000000e+00> : vector<128xf32>
    %29 = vector.multi_reduction <add>, %28, %cst_22 [1] : vector<128x8xf32> to vector<128xf32>
    %30 = vector.shape_cast %29 : vector<128xf32> to vector<128x1xf32>
    %31 = arith.addf %21, %30 : vector<128x1xf32>
    %c0_23 = arith.constant 0 : index
    %c1_24 = arith.constant 1 : index
    %c0_25 = arith.constant 0 : index
    %c1_26 = arith.constant 1 : index
    %c0_27 = arith.constant 0 : index
    %c0_28 = arith.constant 0 : index
    %32 = vector.load %arg2[%c0_23, %c1_24, %c0_25, %c1_26, %c0_27, %c0_28] : memref<2x2x8x2x8x8xf32, #tpu.memory_space<vmem>>, vector<2x1x8x1x8x8xf32>
    %33 = vector.shape_cast %32 : vector<2x1x8x1x8x8xf32> to vector<2x8x8x8xf32>
    %34 = vector.shape_cast %33 : vector<2x8x8x8xf32> to vector<128x8xf32>
    %cst_29 = arith.constant dense<0.000000e+00> : vector<128xf32>
    %35 = vector.multi_reduction <add>, %34, %cst_29 [1] : vector<128x8xf32> to vector<128xf32>
    %36 = vector.shape_cast %35 : vector<128xf32> to vector<128x1xf32>
    %37 = arith.addf %27, %36 : vector<128x1xf32>
    %38 = arith.mulf %34, %34 : vector<128x8xf32>
    %cst_30 = arith.constant dense<0.000000e+00> : vector<128xf32>
    %39 = vector.multi_reduction <add>, %38, %cst_30 [1] : vector<128x8xf32> to vector<128xf32>
    %40 = vector.shape_cast %39 : vector<128xf32> to vector<128x1xf32>
    %41 = arith.addf %31, %40 : vector<128x1xf32>
    %cst_31 = arith.constant 3.125000e-02 : f32
    %42 = vector.broadcast %cst_31 : f32 to vector<128x1xf32>
    %43 = arith.mulf %37, %42 : vector<128x1xf32>
    %cst_32 = arith.constant 3.125000e-02 : f32
    %44 = vector.broadcast %cst_32 : f32 to vector<128x1xf32>
    %45 = arith.mulf %41, %44 : vector<128x1xf32>
    %46 = arith.mulf %43, %43 : vector<128x1xf32>
    %47 = arith.subf %45, %46 : vector<128x1xf32>
    %cst_33 = arith.constant 0.000000e+00 : f32
    %48 = vector.broadcast %cst_33 : f32 to vector<128x1xf32>
    %49 = arith.maximumf %47, %48 : vector<128x1xf32>
    %cst_34 = arith.constant 9.99999974E-6 : f32
    %50 = vector.broadcast %cst_34 : f32 to vector<128x1xf32>
    %51 = arith.addf %49, %50 : vector<128x1xf32>
    %52 = math.rsqrt %51 : vector<128x1xf32>
    %cst_35 = arith.constant 0.000000e+00 : f32
    %53 = vector.broadcast %cst_35 : f32 to vector<128x128xf32>
    %c0_36 = arith.constant 0 : index
    %c0_37 = arith.constant 0 : index
    %c0_38 = arith.constant 0 : index
    %c0_39 = arith.constant 0 : index
    %c0_40 = arith.constant 0 : index
    %c0_41 = arith.constant 0 : index
    %54 = vector.load %arg2[%c0_36, %c0_37, %c0_38, %c0_39, %c0_40, %c0_41] : memref<2x2x8x2x8x8xf32, #tpu.memory_space<vmem>>, vector<2x1x8x1x8x8xf32>
    %55 = vector.shape_cast %54 : vector<2x1x8x1x8x8xf32> to vector<2x8x8x8xf32>
    %56 = vector.shape_cast %55 : vector<2x8x8x8xf32> to vector<128x8xf32>
    %57 = vector.broadcast %43 : vector<128x1xf32> to vector<128x8xf32>
    %58 = arith.subf %56, %57 : vector<128x8xf32>
    %59 = vector.broadcast %52 : vector<128x1xf32> to vector<128x8xf32>
    %60 = arith.mulf %58, %59 : vector<128x8xf32>
    %61 = arith.truncf %60 : vector<128x8xf32> to vector<128x8xbf16>
    %c0_42 = arith.constant 0 : index
    %c0_43 = arith.constant 0 : index
    %62 = vector.load %arg3[%c0_42, %c0_43] : memref<32x128xbf16, #tpu.memory_space<vmem>>, vector<8x128xbf16>
    %cst_44 = arith.constant dense<0.000000e+00> : vector<128x128xf32>
    %63 = tpu.matmul %61, %62, %cst_44 {dimension_numbers = #tpu.dot_dimension_numbers<[1], [0], [0], [1], [0, 0, 1, 1], [], []>} : vector<128x8xbf16>, vector<8x128xbf16>, vector<128x128xf32> -> vector<128x128xf32>
    %64 = arith.addf %53, %63 : vector<128x128xf32>
    %c0_45 = arith.constant 0 : index
    %c1_46 = arith.constant 1 : index
    %c0_47 = arith.constant 0 : index
    %c0_48 = arith.constant 0 : index
    %c0_49 = arith.constant 0 : index
    %c0_50 = arith.constant 0 : index
    %65 = vector.load %arg2[%c0_45, %c1_46, %c0_47, %c0_48, %c0_49, %c0_50] : memref<2x2x8x2x8x8xf32, #tpu.memory_space<vmem>>, vector<2x1x8x1x8x8xf32>
    %66 = vector.shape_cast %65 : vector<2x1x8x1x8x8xf32> to vector<2x8x8x8xf32>
    %67 = vector.shape_cast %66 : vector<2x8x8x8xf32> to vector<128x8xf32>
    %68 = vector.broadcast %43 : vector<128x1xf32> to vector<128x8xf32>
    %69 = arith.subf %67, %68 : vector<128x8xf32>
    %70 = vector.broadcast %52 : vector<128x1xf32> to vector<128x8xf32>
    %71 = arith.mulf %69, %70 : vector<128x8xf32>
    %72 = arith.truncf %71 : vector<128x8xf32> to vector<128x8xbf16>
    %c8 = arith.constant 8 : index
    %c0_51 = arith.constant 0 : index
    %73 = vector.load %arg3[%c8, %c0_51] : memref<32x128xbf16, #tpu.memory_space<vmem>>, vector<8x128xbf16>
    %cst_52 = arith.constant dense<0.000000e+00> : vector<128x128xf32>
    %74 = tpu.matmul %72, %73, %cst_52 {dimension_numbers = #tpu.dot_dimension_numbers<[1], [0], [0], [1], [0, 0, 1, 1], [], []>} : vector<128x8xbf16>, vector<8x128xbf16>, vector<128x128xf32> -> vector<128x128xf32>
    %75 = arith.addf %64, %74 : vector<128x128xf32>
    %c0_53 = arith.constant 0 : index
    %c0_54 = arith.constant 0 : index
    %c0_55 = arith.constant 0 : index
    %c1_56 = arith.constant 1 : index
    %c0_57 = arith.constant 0 : index
    %c0_58 = arith.constant 0 : index
    %76 = vector.load %arg2[%c0_53, %c0_54, %c0_55, %c1_56, %c0_57, %c0_58] : memref<2x2x8x2x8x8xf32, #tpu.memory_space<vmem>>, vector<2x1x8x1x8x8xf32>
    %77 = vector.shape_cast %76 : vector<2x1x8x1x8x8xf32> to vector<2x8x8x8xf32>
    %78 = vector.shape_cast %77 : vector<2x8x8x8xf32> to vector<128x8xf32>
    %79 = vector.broadcast %43 : vector<128x1xf32> to vector<128x8xf32>
    %80 = arith.subf %78, %79 : vector<128x8xf32>
    %81 = vector.broadcast %52 : vector<128x1xf32> to vector<128x8xf32>
    %82 = arith.mulf %80, %81 : vector<128x8xf32>
    %83 = arith.truncf %82 : vector<128x8xf32> to vector<128x8xbf16>
    %c16 = arith.constant 16 : index
    %c0_59 = arith.constant 0 : index
    %84 = vector.load %arg3[%c16, %c0_59] : memref<32x128xbf16, #tpu.memory_space<vmem>>, vector<8x128xbf16>
    %cst_60 = arith.constant dense<0.000000e+00> : vector<128x128xf32>
    %85 = tpu.matmul %83, %84, %cst_60 {dimension_numbers = #tpu.dot_dimension_numbers<[1], [0], [0], [1], [0, 0, 1, 1], [], []>} : vector<128x8xbf16>, vector<8x128xbf16>, vector<128x128xf32> -> vector<128x128xf32>
    %86 = arith.addf %75, %85 : vector<128x128xf32>
    %c0_61 = arith.constant 0 : index
    %c1_62 = arith.constant 1 : index
    %c0_63 = arith.constant 0 : index
    %c1_64 = arith.constant 1 : index
    %c0_65 = arith.constant 0 : index
    %c0_66 = arith.constant 0 : index
    %87 = vector.load %arg2[%c0_61, %c1_62, %c0_63, %c1_64, %c0_65, %c0_66] : memref<2x2x8x2x8x8xf32, #tpu.memory_space<vmem>>, vector<2x1x8x1x8x8xf32>
    %88 = vector.shape_cast %87 : vector<2x1x8x1x8x8xf32> to vector<2x8x8x8xf32>
    %89 = vector.shape_cast %88 : vector<2x8x8x8xf32> to vector<128x8xf32>
    %90 = vector.broadcast %43 : vector<128x1xf32> to vector<128x8xf32>
    %91 = arith.subf %89, %90 : vector<128x8xf32>
    %92 = vector.broadcast %52 : vector<128x1xf32> to vector<128x8xf32>
    %93 = arith.mulf %91, %92 : vector<128x8xf32>
    %94 = arith.truncf %93 : vector<128x8xf32> to vector<128x8xbf16>
    %c24 = arith.constant 24 : index
    %c0_67 = arith.constant 0 : index
    %95 = vector.load %arg3[%c24, %c0_67] : memref<32x128xbf16, #tpu.memory_space<vmem>>, vector<8x128xbf16>
    %cst_68 = arith.constant dense<0.000000e+00> : vector<128x128xf32>
    %96 = tpu.matmul %94, %95, %cst_68 {dimension_numbers = #tpu.dot_dimension_numbers<[1], [0], [0], [1], [0, 0, 1, 1], [], []>} : vector<128x8xbf16>, vector<8x128xbf16>, vector<128x128xf32> -> vector<128x128xf32>
    %97 = arith.addf %86, %96 : vector<128x128xf32>
    %c0_69 = arith.constant 0 : index
    %c0_70 = arith.constant 0 : index
    %98 = vector.load %arg4[%c0_69, %c0_70] : memref<1x128xf32, #tpu.memory_space<vmem>>, vector<1x128xf32>
    %99 = vector.broadcast %98 : vector<1x128xf32> to vector<128x128xf32>
    %100 = arith.addf %97, %99 : vector<128x128xf32>
    %101 = vector.shape_cast %100 : vector<128x128xf32> to vector<2x8x8x128xf32>
    %c0_71 = arith.constant 0 : index
    %c0_72 = arith.constant 0 : index
    %c0_73 = arith.constant 0 : index
    %c0_74 = arith.constant 0 : index
    %102 = vector.load %arg5[%c0_71, %c0_72, %c0_73, %c0_74] : memref<2x8x8x128xf32, #tpu.memory_space<vmem>>, vector<2x8x8x128xf32>
    tpu.vector_store %arg5[%c0_71, %c0_72, %c0_73, %c0_74], %101 {strides = array<i32>} : memref<2x8x8x128xf32, #tpu.memory_space<vmem>>, vector<2x8x8x128xf32>,
    return
  }
  func.func @transform_0(%arg0: i32, %arg1: i32) -> (i32, i32, i32, i32, i32, i32) {
    %c0_i32 = arith.constant 0 : i32
    %c0_i32_0 = arith.constant 0 : i32
    %c0_i32_1 = arith.constant 0 : i32
    %c0_i32_2 = arith.constant 0 : i32
    %c0_i32_3 = arith.constant 0 : i32
    return %arg0, %c0_i32, %arg1, %c0_i32_0, %c0_i32_1, %c0_i32_2 : i32, i32, i32, i32, i32, i32
  }
  func.func @transform_1(%arg0: i32, %arg1: i32) -> (i32, i32) {
    %c0_i32 = arith.constant 0 : i32
    %c0_i32_0 = arith.constant 0 : i32
    %c0_i32_1 = arith.constant 0 : i32
    return %c0_i32, %c0_i32_0 : i32, i32
  }
  func.func @transform_2(%arg0: i32, %arg1: i32) -> (i32, i32) {
    %c0_i32 = arith.constant 0 : i32
    %c0_i32_0 = arith.constant 0 : i32
    %c0_i32_1 = arith.constant 0 : i32
    return %c0_i32, %c0_i32_0 : i32, i32
  }
  func.func @transform_3(%arg0: i32, %arg1: i32) -> (i32, i32, i32, i32) {
    %c0_i32 = arith.constant 0 : i32
    %c0_i32_0 = arith.constant 0 : i32
    %c0_i32_1 = arith.constant 0 : i32
    return %arg0, %arg1, %c0_i32, %c0_i32_0 : i32, i32, i32, i32
  }
}

</mosaic_0001>

<bundles_post_ra>
// kernel: tpu_custom_call.1
= control target key start
LH: loop header
LB: loop body
LE: loop exit
PB: predicated region body
PF: predicated region fallthrough
CT: control target
= control target key end

     0   :  { %8 = vsyncpa [#allocation3], 0  ;;  %s3515_s0 = inlined_call_operand.hbm [shape: f32[8,2,8,2,8,8], index: 0, kind: input, shape index: {}]   ;;  %s3516_s1 = inlined_call_operand.hbm [shape: bf16[32,128], index: 1, kind: input, shape index: {}]   ;;  %s3517_s2 = inlined_call_operand.vmem [shape: f32[1,128], index: 2, kind: input, shape index: {}]   ;;  %s3518_s3 = inlined_call_operand.hbm [shape: f32[8,8,8,128], index: 3, kind: output, shape index: {}]  }
   0x1   :  { %10 = vsyncpa [#allocation3 + $0x1], 0 }
   0x2   :  { %11 = vsyncpa [#allocation6], 0 }
   0x3   :  { %12 = vsyncpa [#allocation4], 0 }
   0x4   :  { %14 = vsyncpa [#allocation4 + $0x1], 0  ;;  %s2355_s12 = smov 0   ;;  %s2357_s13 = smov 0  }
   0x5   :  { %s2359_s14 = smov 0   ;;  %s2361_s15 = smov 0  }
   0x6   :  { %s2363_s16 = smov 0   ;;  %s2365_s17 = smov 0  }
   0x7 LB: > { %s1831_s18 = sadd.s32 4294967295, %s2324_s17   ;;  %s1832_s19 = sadd.s32 4294967294, %s2324_s17   ;;  %s2324_s17 = sphi %s2365_s17, %s20_s17   ;;  %s2320_s16 = sphi %s2363_s16, %s3568_s16   ;;  %s2316_s15 = sphi %s2361_s15, %s3567_s15   ;;  %s2312_s14 = sphi %s2359_s14, %s3566_s14   ;;  %s2308_s13 = sphi %s2357_s13, %s3565_s13   ;;  %s2304_s12 = sphi %s2355_s12, %s3564_s12  }
   0x8   : > { %p54_p0 = scmp.ne.s32.totalorder %s2308_s13, %s2304_s12  ;;  %p2389_p1 = scmp.eq.s32.totalorder %s1831_s18, 0 }
   0x9   : > { %p2393_p2 = scmp.eq.s32.totalorder %s1831_s18, 3  ;;  %p128_p3 = scmp.eq.s32.totalorder %s1832_s19, 3 }
   0xa   : > { %p2399_p4 = por %p2389_p1, %p54_p0  ;;  %p1833_p5 = scmp.ge.s32.totalorder %s2324_s17, 1 }
   0xb   : > { %p2404_p6 = por %p128_p3, %p54_p0  ;;  %p135_p7 = scmp.lt.s32.totalorder %s2324_s17, 5 }
   0xc   : > { %s2326_s25 = smov [#allocation5]   ;;  %s32_s28 = sadd.s32 1, %s2320_s16 }
   0xd   : > { %s3530_s23 = scalar_select %p2404_p6, 1, 0 }
   0xe   : > { %p2409_p8 = pnand %p1833_p5, %p135_p7  ;;  %s147_s26 = sshll.u32 %s2326_s25, 4  ;;  %s148_s26 = int_to_ptr.vmem [resolvable:$true] %s147_s26 }
   0xf   : > { %s2197_s29 = scalar_lea.vmem %s148_s26, 256  ;;  %p2205_p3 = scmp.lt.s32.totalorder %s148_s26, %s148_s26 }
  0x10   : > { %p2055_p9 = pneg %p2409_p8  ;;  %p2198_p12 = scmp.ne.s32.totalorder %s148_s26, %s2197_s29 }
  0x11   : > { %p2206_p5 = scmp.lt.s32.totalorder %s2197_s29, %s2197_s29 }
  0x12   : > { %p2417_p10 = pnand %p2055_p9, %p2389_p1 }
  0x13   : > { %p2207_p7 = por %p2206_p5, %p2205_p3 }
  0x14   : > { %p2188_p11 = pneg %p2417_p10 }
  0x16   : > { %p2200_p13 = pnand %p2198_p12, %p2188_p11 }
  0x18   : > { %p2201_p0 = pneg %p2200_p13 }
  0x1a   : > { %p2208_p6 = pnand %p2207_p7, %p2201_p0 }
  0x1c   : > { %2211 = shalt.err (!%p2208_p6)
}
  0x1d   : > { %s2327_s30 = smov 64   ;;  %s2328_s4 = smov 4  }
  0x1e   : > { %2058 = dma.hbm_to_vmem [thread:$0]  (!%p2417_p10), %s3516_s1, 256, %s148_s26, [#allocation6], %s2327_s30, %s2327_s30, %s2328_s4  }
  0x1f   : > { %p34_p9 = scmp.ge.s32.totalorder %s32_s28, 4  ;;  %s41_s7 = sadd.s32 1, %s2312_s14 }
  0x20   : > { %p48_p6 = scmp.ne.s32.totalorder %s2312_s14, %s2308_s13  ;;  %p49_p11 = scmp.eq.s32.totalorder %s2324_s17, 0 }
  0x21   : > { %s3570_s28 = smov (%p34_p9, %s32_s28), 0  ;;  %p2068_p0 = scmp.lt.s32.totalorder %s2324_s17, 4 }
  0x22   : > { %p2435_p12 = por %p49_p11, %p48_p6  ;;  %p2441_p13 = por %p2393_p2, %p48_p6 }
  0x23   : > { %s36_s10 = ssub.s32 %s2320_s16, %s3570_s28  ;;  %s164_s11 = sand.u32 1, %s2312_s14  }
  0x24   : > { %s3534_s9 = scalar_select %p2441_p13, 1, 0 }
  0x25   : > { %p39_p10 = scmp.eq.s32.totalorder %s36_s10, 0  ;;  %s1836_s18 = sshll.u32 %s164_s11, 9 }
  0x26   : > { %s1932_s25 = sshll.u32 %s2320_s16, 13  ;;  %s168_s30 = scalar_lea.vmem [#allocation2], %s1836_s18 }
  0x27   : > { %s2450_s19 = scalar_select %p39_p10, %s2312_s14, %s41_s7  }
  0x28   : > { %s178_s29 = scalar_lea.hbm %s3515_s0, %s1932_s25  ;;  %s179_s4 = sshll.u32 %s168_s30, 4  ;;  %s180_s4 = int_to_ptr.vmem [resolvable:$true] %s179_s4 }
  0x29   : > { %p2458_p2 = pnand %p2068_p0, %p2435_p12  ;;  %s165_s5 = scalar_lea.sflag [#allocation3], %s164_s11 }
  0x2a   : > { %s2225_s6 = scalar_lea.vmem %s180_s4, 8192  ;;  %s2329_s7 = smov [#allocation2]  }
  0x2b   : > { %p2214_p3 = pneg %p2458_p2  ;;  %p2226_p5 = scmp.ne.s32.totalorder %s180_s4, %s2225_s6 }
  0x2c   : > { %s2230_s10 = sshll.u32 %s2329_s7, 4  ;;  %s2231_s10 = int_to_ptr.vmem [resolvable:$false] %s2230_s10 }
  0x2d   : > { %p2228_p7 = pnand %p2226_p5, %p2214_p3  ;;  %s2232_s25 = scalar_lea.vmem %s2231_s10, 16384 }
  0x2e   : > { %p2233_p6 = scmp.lt.s32.totalorder %s180_s4, %s2231_s10  ;;  %p2234_p11 = scmp.lt.s32.totalorder %s2232_s25, %s2225_s6 }
  0x2f   : > { %p2229_p9 = pneg %p2228_p7 }
  0x30   : > { %p2235_p10 = por %p2234_p11, %p2233_p6 }
  0x32   : > { %p2236_p13 = pnand %p2235_p10, %p2229_p9 }
  0x34   : > { %2239 = shalt.err (!%p2236_p13)
}
  0x35   : > { %s2330_s8 = smov 128   ;;  %s2331_s18 = smov 8  }
  0x36   : > { %2062 = dma.hbm_to_vmem [thread:$0]  (!%p2458_p2), %s178_s29, 8192, %s180_s4, %s165_s5, %s2330_s8, %s2330_s8, %s2331_s18  }
  0x37   : > { %191 = sbr.rel (%p2409_p8) target bundleno = 738 (0x2e2), region = 32 }
  0x3c   : > { %s2469_s11 = sand.u32 1, %s2308_s13  }
  0x3d   : > { %s1841_s26 = sshll.u32 %s2469_s11, 9  ;;  %s194_s27 = scalar_lea.sflag [#allocation3], %s2469_s11 }
  0x3e   : > { %s2473_s30 = scalar_lea.vmem [#allocation2], %s1841_s26 }
  0x3f   : > { %2291 = dma.done.wait (%p2399_p4), %s194_s27, 8192  }
  0x40   : > { %2293 = vsyncadd (%p2399_p4), %s194_s27, 4294959104 }
  0x41   : > { %2295 = dma.done.wait (%p2389_p1), [#allocation6], 256  }
  0x42   : > { %2297 = vsyncadd (%p2389_p1), [#allocation6], 4294967040  ;;  %vm245_vm0 = vcmask 64512   ;;  %v2484_v0 = vld [vmem:[%s2473_s30 + $0x80] sm:$0xff]  ;;  %v2490_v2 = vld [vmem:[%s2473_s30 + $0x90] sm:$0xff]  ;;  %vm1091_vm1 = vcmask 1043456  }
  0x43   : > { %v2487_v1 = vld [vmem:[%s2473_s30] sm:$0xff]  ;;  %v407_v3 = vsel %vm245_vm0, %v2484_v0, 0.0  ;;  %v2497_v5 = vld [vmem:[%s2473_s30 + $0x10] sm:$0xff]  ;;  %v410_v6 = vsel %vm245_vm0, %v2490_v2, 0.0  ;;  %v472_v20 = vmul.f32 %v2490_v2, %v2490_v2  ;;  %v471_v21 = vmul.f32 %v2484_v0, %v2484_v0  ;;  %v2536_v24 = vld [vmem:[%s2473_s30 + $0x18] sm:$0xff]  ;;  %s1843_s20 = sshll.u32 %s2469_s11, 7 }
  0x44   : > { %v246_v4 = vsel %vm245_vm0, %v2487_v1, 0.0  ;;  %408 = vadd.xlane.f32.xlu1 %v407_v3  ;;  %v249_v7 = vsel %vm245_vm0, %v2497_v5, 0.0  ;;  %v2504_v8 = vld [vmem:[%s2473_s30 + $0x30] sm:$0xff]  ;;  %v2507_v9 = vld [vmem:[%s2473_s30 + $0x20] sm:$0xff]  ;;  %v311_v16 = vmul.f32 %v2497_v5, %v2497_v5  ;;  %v310_v17 = vmul.f32 %v2487_v1, %v2487_v1  ;;  %v2539_v25 = vld [vmem:[%s2473_s30 + $0x8] sm:$0xff]  ;;  %s3412_s29 = scalar_lea.vmem [#allocation7], %s1843_s20 }
  0x45   : > { %247 = vadd.xlane.f32.xlu0 %v246_v4  ;;  %v255_v10 = vsel %vm245_vm0, %v2504_v8, 0.0  ;;  %v252_v11 = vsel %vm245_vm0, %v2507_v9, 0.0  ;;  %v2514_v12 = vld [vmem:[%s2473_s30 + $0xb0] sm:$0xff]  ;;  %v2517_v13 = vld [vmem:[%s2473_s30 + $0xa0] sm:$0xff]  ;;  %v490_v22 = vsel %vm245_vm0, %v472_v20, 0.0  ;;  %v487_v23 = vsel %vm245_vm0, %v471_v21, 0.0 }
  0x46   : > { %v416_v14 = vsel %vm245_vm0, %v2514_v12, 0.0  ;;  %v413_v15 = vsel %vm245_vm0, %v2517_v13, 0.0  ;;  %v329_v18 = vsel %vm245_vm0, %v311_v16, 0.0  ;;  %v326_v19 = vsel %vm245_vm0, %v310_v17, 0.0  ;;  %v2558_v36 = vld [vmem:[%s2473_s30 + $0x38] sm:$0xff]  ;;  %v2561_v37 = vld [vmem:[%s2473_s30 + $0x28] sm:$0xff] }
  0x47   : > { %v571_v26 = vsel %vm245_vm0, %v2536_v24, 0.0  ;;  %v568_v27 = vsel %vm245_vm0, %v2539_v25, 0.0  ;;  %v313_v28 = vmul.f32 %v2504_v8, %v2504_v8  ;;  %v312_v29 = vmul.f32 %v2507_v9, %v2507_v9  ;;  %v2574_v44 = vld [vmem:[%s2473_s30 + $0x98] sm:$0xff]  ;;  %v2577_v45 = vld [vmem:[%s2473_s30 + $0x88] sm:$0xff]  ;;  %v234_v3 = vld [vmem:[%s2473_s30 + $0x50] sm:$0xff]  ;;  %s1934_s4 = sshll.u32 %s2316_s15, 11 }
  0x48   : > { %411 = vadd.xlane.f32.xlu1 %v410_v6  ;;  %v474_v32 = vmul.f32 %v2514_v12, %v2514_v12  ;;  %v473_v33 = vmul.f32 %v2517_v13, %v2517_v13  ;;  %v577_v38 = vsel %vm245_vm0, %v2558_v36, 0.0  ;;  %v574_v39 = vsel %vm245_vm0, %v2561_v37, 0.0  ;;  %v2590_v52 = vld [vmem:[%s2473_s30 + $0xb8] sm:$0xff]  ;;  %v2593_v53 = vld [vmem:[%s2473_s30 + $0xa8] sm:$0xff]  ;;  %v233_v4 = vld [vmem:[%s2473_s30 + $0x40] sm:$0xff]  ;;  %s1734_s21 = sshll.u32 %s3412_s29, 4  ;;  %s3463_s7 = scalar_lea.hbm %s3518_s3, %s1934_s4  ;;  %s3465_s21 = int_to_ptr.vmem [resolvable:$true] %s1734_s21 }
  0x49   : > { %250 = vadd.xlane.f32.xlu0 %v249_v7  ;;  %v335_v30 = vsel %vm245_vm0, %v313_v28, 0.0  ;;  %v332_v31 = vsel %vm245_vm0, %v312_v29, 0.0  ;;  %v633_v40 = vmul.f32 %v2536_v24, %v2536_v24  ;;  %v632_v41 = vmul.f32 %v2539_v25, %v2539_v25  ;;  %v236_v16 = vld [vmem:[%s2473_s30 + $0x70] sm:$0xff]  ;;  %v235_v17 = vld [vmem:[%s2473_s30 + $0x60] sm:$0xff]  ;;  %s1718_s15 = scalar_lea.sflag [#allocation4], %s2469_s11  ;;  %s2240_s10 = scalar_lea.vmem %s3465_s21, 2048 }
  0x4a   : > { %v496_v34 = vsel %vm245_vm0, %v474_v32, 0.0  ;;  %v493_v35 = vsel %vm245_vm0, %v473_v33, 0.0  ;;  %v732_v46 = vsel %vm245_vm0, %v2574_v44, 0.0  ;;  %v729_v47 = vsel %vm245_vm0, %v2577_v45, 0.0  ;;  %v1851_v20 = vld [vmem:[%s2473_s30 + $0xf0] sm:$0xff]  ;;  %v1850_v21 = vld [vmem:[%s2473_s30 + $0xe0] sm:$0xff]  ;;  %p2241_p1 = scmp.ne.s32.totalorder %s3465_s21, %s2240_s10 }
  0x4b   : > { %v651_v42 = vsel %vm245_vm0, %v633_v40, 0.0  ;;  %v648_v43 = vsel %vm245_vm0, %v632_v41, 0.0  ;;  %v635_v48 = vmul.f32 %v2558_v36, %v2558_v36  ;;  %v634_v49 = vmul.f32 %v2561_v37, %v2561_v37  ;;  %p3562_p4 = scmp.ne.s32.totalorder %s3534_s9, 0  ;;  %s2332_s25 = smov [#allocation7]  }
  0x4c   : > { %256 = vadd.xlane.f32.xlu1 %v255_v10  ;;  %v738_v54 = vsel %vm245_vm0, %v2590_v52, 0.0  ;;  %v735_v55 = vsel %vm245_vm0, %v2593_v53, 0.0  ;;  %v794_v56 = vmul.f32 %v2574_v44, %v2574_v44  ;;  %v793_v57 = vmul.f32 %v2577_v45, %v2577_v45  ;;  %v1849_v10 = vld [vmem:[%s2473_s30 + $0xd0] sm:$0xff]  ;;  %s2244_s8 = sshll.u32 %s2332_s25, 4  ;;  %s2245_s8 = int_to_ptr.vmem [resolvable:$false] %s2244_s8 }
  0x4d   : > { %253 = vadd.xlane.f32.xlu0 %v252_v11  ;;  %v657_v50 = vsel %vm245_vm0, %v635_v48, 0.0  ;;  %v654_v51 = vsel %vm245_vm0, %v634_v49, 0.0  ;;  %v796_v60 = vmul.f32 %v2590_v52, %v2590_v52  ;;  %v795_v61 = vmul.f32 %v2593_v53, %v2593_v53  ;;  %v1848_v11 = vld [vmem:[%s2473_s30 + $0xc0] sm:$0xff]  ;;  %p2242_p8 = pnand %p2241_p1, %p3562_p4  ;;  %s2246_s18 = scalar_lea.vmem %s2245_s8, 4096 }
  0x4e   : > { %v812_v58 = vsel %vm245_vm0, %v794_v56, 0.0  ;;  %v809_v59 = vsel %vm245_vm0, %v793_v57, 0.0  ;;  %v261_v6 = vsel %vm245_vm0, %v234_v3, 0.0  ;;  %v258_v7 = vsel %vm245_vm0, %v233_v4, 0.0  ;;  %p2247_p13 = scmp.lt.s32.totalorder %s3465_s21, %s2245_s8  ;;  %p2248_p0 = scmp.lt.s32.totalorder %s2246_s18, %s2240_s10 }
  0x4f   : > { %v818_v62 = vsel %vm245_vm0, %v796_v60, 0.0  ;;  %v815_v63 = vsel %vm245_vm0, %v795_v61, 0.0  ;;  %v317_v40 = vmul.f32 %v236_v16, %v236_v16  ;;  %v316_v41 = vmul.f32 %v235_v17, %v235_v17  ;;  %p2243_p12 = pneg %p2242_p8 }
  0x50   : > { %417 = vadd.xlane.f32.xlu1 %v416_v14  ;;  %v422_v14 = vsel %vm245_vm0, %v1849_v10, 0.0  ;;  %p2249_p2 = por %p2248_p0, %p2247_p13 }
  0x51   : > { %414 = vadd.xlane.f32.xlu0 %v413_v15  ;;  %v419_v15 = vsel %vm245_vm0, %v1848_v11, 0.0 }
  0x52   : > { %p2250_p3 = pnand %p2249_p2, %p2243_p12 }
  0x54   : > { %330 = vadd.xlane.f32.xlu1 %v329_v18  ;;  %v267_v18 = vsel %vm245_vm0, %v236_v16, 0.0  ;;  %v2682_v16 = vld [vmem:[%s2473_s30 + $0xf8] sm:$0xff] }
  0x55   : > { %327 = vadd.xlane.f32.xlu0 %v326_v19  ;;  %v264_v19 = vsel %vm245_vm0, %v235_v17, 0.0  ;;  %v2685_v17 = vld [vmem:[%s2473_s30 + $0xe8] sm:$0xff] }
  0x58   : > { %491 = vadd.xlane.f32.xlu1 %v490_v22  ;;  %v428_v22 = vsel %vm245_vm0, %v1851_v20, 0.0 }
  0x59   : > { %488 = vadd.xlane.f32.xlu0 %v487_v23  ;;  %v425_v23 = vsel %vm245_vm0, %v1850_v21, 0.0 }
  0x5c   : > { %572 = vadd.xlane.f32.xlu1 %v571_v26  ;;  %v315_v26 = vmul.f32 %v234_v3, %v234_v3  ;;  %v2666_v3 = vld [vmem:[%s2473_s30 + $0xd8] sm:$0xff] }
  0x5d   : > { %569 = vadd.xlane.f32.xlu0 %v568_v27  ;;  %v314_v27 = vmul.f32 %v233_v4, %v233_v4  ;;  %v2669_v4 = vld [vmem:[%s2473_s30 + $0xc8] sm:$0xff] }
  0x5e   : > { %v341_v28 = vsel %vm245_vm0, %v315_v26, 0.0  ;;  %v800_v26 = vmul.f32 %v2682_v16, %v2682_v16 }
  0x5f   : > { %v338_v29 = vsel %vm245_vm0, %v314_v27, 0.0  ;;  %v799_v27 = vmul.f32 %v2685_v17, %v2685_v17 }
  0x60   : > { %336 = vadd.xlane.f32.xlu1 %v335_v30  ;;  %v476_v30 = vmul.f32 %v1849_v10, %v1849_v10 }
  0x61   : > { %333 = vadd.xlane.f32.xlu0 %v332_v31  ;;  %v475_v31 = vmul.f32 %v1848_v11, %v1848_v11 }
  0x62   : > { %v502_v32 = vsel %vm245_vm0, %v476_v30, 0.0  ;;  %v238_v30 = vld [vmem:[%s2473_s30 + $0x110] sm:$0xff] }
  0x63   : > { %v499_v33 = vsel %vm245_vm0, %v475_v31, 0.0  ;;  %v237_v31 = vld [vmem:[%s2473_s30 + $0x100] sm:$0xff] }
  0x64   : > { %497 = vadd.xlane.f32.xlu1 %v496_v34  ;;  %v2632_v34 = vld [vmem:[%s2473_s30 + $0x58] sm:$0xff] }
  0x65   : > { %494 = vadd.xlane.f32.xlu0 %v493_v35  ;;  %v2635_v35 = vld [vmem:[%s2473_s30 + $0x48] sm:$0xff]  ;;  %v637_v60 = vmul.f32 %v2632_v34, %v2632_v34 }
  0x66   : > { %v636_v61 = vmul.f32 %v2635_v35, %v2635_v35 }
  0x68   : > { %578 = vadd.xlane.f32.xlu1 %v577_v38  ;;  %v583_v38 = vsel %vm245_vm0, %v2632_v34, 0.0 }
  0x69   : > { %575 = vadd.xlane.f32.xlu0 %v574_v39  ;;  %v580_v39 = vsel %vm245_vm0, %v2635_v35, 0.0 }
  0x6c   : > { %652 = vadd.xlane.f32.xlu1 %v651_v42  ;;  %v347_v42 = vsel %vm245_vm0, %v317_v40, 0.0 }
  0x6d   : > { %649 = vadd.xlane.f32.xlu0 %v648_v43  ;;  %v344_v43 = vsel %vm245_vm0, %v316_v41, 0.0 }
  0x70   : > { %733 = vadd.xlane.f32.xlu1 %v732_v46  ;;  %v478_v46 = vmul.f32 %v1851_v20, %v1851_v20  ;;  %v798_v20 = vmul.f32 %v2666_v3, %v2666_v3 }
  0x71   : > { %730 = vadd.xlane.f32.xlu0 %v729_v47  ;;  %v477_v47 = vmul.f32 %v1850_v21, %v1850_v21  ;;  %v797_v21 = vmul.f32 %v2669_v4, %v2669_v4 }
  0x72   : > { %v508_v48 = vsel %vm245_vm0, %v478_v46, 0.0 }
  0x73   : > { %v505_v49 = vsel %vm245_vm0, %v477_v47, 0.0 }
  0x74   : > { %658 = vadd.xlane.f32.xlu1 %v657_v50  ;;  %v2646_v50 = vld [vmem:[%s2473_s30 + $0x78] sm:$0xff] }
  0x75   : > { %655 = vadd.xlane.f32.xlu0 %v654_v51  ;;  %v2649_v51 = vld [vmem:[%s2473_s30 + $0x68] sm:$0xff]  ;;  %v639_v10 = vmul.f32 %v2646_v50, %v2646_v50 }
  0x76   : > { %v638_v11 = vmul.f32 %v2649_v51, %v2649_v51 }
  0x78   : > { %739 = vadd.xlane.f32.xlu1 %v738_v54  ;;  %v1066_v54 = vld [vmem:[#allocation5 + $0x4] sm:$0xf] }
  0x79   : > { %736 = vadd.xlane.f32.xlu0 %v735_v55  ;;  %2043 = vmatprep.subr.msk.bf16.mxu0 %vm1091_vm1, %v1066_v54  ;;  %v1025_v55 = vld [vmem:[#allocation5] sm:$0xf]  ;;  %v1093_v56 = vsel %vm1091_vm1, %v1066_v54, 0 }
  0x7a   : > { %v1217_v57 = vsel %vm1091_vm1, %v1025_v55, 0  ;;  %2044 = vmatprep.subr.msk.bf16.mxu1 %vm1091_vm1, %v1025_v55  ;;  %1972 = vmatpush3.bf16.msra.mxu0 %v1093_v56 }
  0x7b   : > { %1990 = vmatpush3.bf16.msra.mxu1 %v1217_v57 }
  0x7c   : > { %813 = vadd.xlane.f32.xlu1 %v812_v58  ;;  %v589_v58 = vsel %vm245_vm0, %v2646_v50, 0.0 }
  0x7d   : > { %810 = vadd.xlane.f32.xlu0 %v809_v59  ;;  %v586_v59 = vsel %vm245_vm0, %v2649_v51, 0.0 }
  0x80   : > { %819 = vadd.xlane.f32.xlu1 %v818_v62  ;;  %v663_v62 = vsel %vm245_vm0, %v637_v60, 0.0 }
  0x81   : > { %816 = vadd.xlane.f32.xlu0 %v815_v63  ;;  %v660_v63 = vsel %vm245_vm0, %v636_v61, 0.0 }
  0x84   : > { %262 = vadd.xlane.f32.xlu1 %v261_v6  ;;  %v744_v6 = vsel %vm245_vm0, %v2666_v3, 0.0 }
  0x85   : > { %259 = vadd.xlane.f32.xlu0 %v258_v7  ;;  %v741_v7 = vsel %vm245_vm0, %v2669_v4, 0.0 }
  0x88   : > { %423 = vadd.xlane.f32.xlu1 %v422_v14  ;;  %v669_v14 = vsel %vm245_vm0, %v639_v10, 0.0 }
  0x89   : > { %420 = vadd.xlane.f32.xlu0 %v419_v15  ;;  %v666_v15 = vsel %vm245_vm0, %v638_v11, 0.0 }
  0x8c   : > { %268 = vadd.xlane.f32.xlu1 %v267_v18  ;;  %v750_v18 = vsel %vm245_vm0, %v2682_v16, 0.0 }
  0x8d   : > { %265 = vadd.xlane.f32.xlu0 %v264_v19  ;;  %v747_v19 = vsel %vm245_vm0, %v2685_v17, 0.0 }
  0x90   : > { %429 = vadd.xlane.f32.xlu1 %v428_v22  ;;  %v824_v22 = vsel %vm245_vm0, %v798_v20, 0.0 }
  0x91   : > { %426 = vadd.xlane.f32.xlu0 %v425_v23  ;;  %v821_v23 = vsel %vm245_vm0, %v797_v21, 0.0 }
  0x94   : > { %342 = vadd.xlane.f32.xlu1 %v341_v28  ;;  %v830_v28 = vsel %vm245_vm0, %v800_v26, 0.0 }
  0x95   : > { %339 = vadd.xlane.f32.xlu0 %v338_v29  ;;  %v827_v29 = vsel %vm245_vm0, %v799_v27, 0.0 }
  0x98   : > { %503 = vadd.xlane.f32.xlu1 %v502_v32  ;;  %v273_v32 = vsel %vm245_vm0, %v238_v30, 0.0 }
  0x99   : > { %500 = vadd.xlane.f32.xlu0 %v499_v33  ;;  %v270_v33 = vsel %vm245_vm0, %v237_v31, 0.0 }
  0x9c   : > { %584 = vadd.xlane.f32.xlu1 %v583_v38  ;;  %v1853_v38 = vld [vmem:[%s2473_s30 + $0x190] sm:$0xff] }
  0x9d   : > { %581 = vadd.xlane.f32.xlu0 %v580_v39  ;;  %v1852_v39 = vld [vmem:[%s2473_s30 + $0x180] sm:$0xff]  ;;  %v434_v40 = vsel %vm245_vm0, %v1853_v38, 0.0 }
  0x9e   : > { %v431_v41 = vsel %vm245_vm0, %v1852_v39, 0.0 }
  0xa0   : > { %348 = vadd.xlane.f32.xlu1 %v347_v42  ;;  %v240_v42 = vld [vmem:[%s2473_s30 + $0x130] sm:$0xff] }
  0xa1   : > { %345 = vadd.xlane.f32.xlu0 %v344_v43  ;;  %v239_v43 = vld [vmem:[%s2473_s30 + $0x120] sm:$0xff]  ;;  %v279_v46 = vsel %vm245_vm0, %v240_v42, 0.0  ;;  %v321_v26 = vmul.f32 %v240_v42, %v240_v42  ;;  %v1871_v42 = vld [vmem:[%s2473_s30 + $0x138] sm:$0xff] }
  0xa2   : > { %v276_v47 = vsel %vm245_vm0, %v239_v43, 0.0  ;;  %v320_v27 = vmul.f32 %v239_v43, %v239_v43  ;;  %v1870_v43 = vld [vmem:[%s2473_s30 + $0x128] sm:$0xff] }
  0xa4   : > { %509 = vadd.xlane.f32.xlu1 %v508_v48  ;;  %v1855_v48 = vld [vmem:[%s2473_s30 + $0x1b0] sm:$0xff] }
  0xa5   : > { %506 = vadd.xlane.f32.xlu0 %v505_v49  ;;  %v1854_v49 = vld [vmem:[%s2473_s30 + $0x1a0] sm:$0xff]  ;;  %v440_v56 = vsel %vm245_vm0, %v1855_v48, 0.0 }
  0xa6   : > { %v437_v57 = vsel %vm245_vm0, %v1854_v49, 0.0 }
  0xa8   : > { %590 = vadd.xlane.f32.xlu1 %v589_v58  ;;  %v319_v58 = vmul.f32 %v238_v30, %v238_v30  ;;  %v359_v30 = vsel %vm245_vm0, %v321_v26, 0.0 }
  0xa9   : > { %587 = vadd.xlane.f32.xlu0 %v586_v59  ;;  %v318_v59 = vmul.f32 %v237_v31, %v237_v31  ;;  %v356_v31 = vsel %vm245_vm0, %v320_v27, 0.0 }
  0xac   : > { %664 = vadd.xlane.f32.xlu1 %v663_v62  ;;  %v353_v62 = vsel %vm245_vm0, %v319_v58, 0.0 }
  0xad   : > { %661 = vadd.xlane.f32.xlu0 %v660_v63  ;;  %v350_v63 = vsel %vm245_vm0, %v318_v59, 0.0 }
  0xb0   : > { %745 = vadd.xlane.f32.xlu1 %v744_v6  ;;  %v480_v6 = vmul.f32 %v1853_v38, %v1853_v38 }
  0xb1   : > { %742 = vadd.xlane.f32.xlu0 %v741_v7  ;;  %v479_v7 = vmul.f32 %v1852_v39, %v1852_v39 }
  0xb4   : > { %670 = vadd.xlane.f32.xlu1 %v669_v14  ;;  %v514_v14 = vsel %vm245_vm0, %v480_v6, 0.0  ;;  %v2766_v6 = vld [vmem:[%s2473_s30 + $0x198] sm:$0xff] }
  0xb5   : > { %667 = vadd.xlane.f32.xlu0 %v666_v15  ;;  %v511_v15 = vsel %vm245_vm0, %v479_v7, 0.0  ;;  %v2769_v7 = vld [vmem:[%s2473_s30 + $0x188] sm:$0xff] }
  0xb8   : > { %751 = vadd.xlane.f32.xlu1 %v750_v18  ;;  %v1869_v18 = vld [vmem:[%s2473_s30 + $0x118] sm:$0xff] }
  0xb9   : > { %748 = vadd.xlane.f32.xlu0 %v747_v19  ;;  %v1868_v19 = vld [vmem:[%s2473_s30 + $0x108] sm:$0xff] }
  0xbc   : > { %825 = vadd.xlane.f32.xlu1 %v824_v22  ;;  %v595_v22 = vsel %vm245_vm0, %v1869_v18, 0.0 }
  0xbd   : > { %822 = vadd.xlane.f32.xlu0 %v821_v23  ;;  %v592_v23 = vsel %vm245_vm0, %v1868_v19, 0.0 }
  0xc0   : > { %831 = vadd.xlane.f32.xlu1 %v830_v28 }
  0xc1   : > { %828 = vadd.xlane.f32.xlu0 %v827_v29 }
  0xc4   : > { %274 = vadd.xlane.f32.xlu1 %v273_v32  ;;  %v482_v32 = vmul.f32 %v1855_v48, %v1855_v48  ;;  %v601_v48 = vsel %vm245_vm0, %v1871_v42, 0.0 }
  0xc5   : > { %271 = vadd.xlane.f32.xlu0 %v270_v33  ;;  %v481_v33 = vmul.f32 %v1854_v49, %v1854_v49  ;;  %v598_v49 = vsel %vm245_vm0, %v1870_v43, 0.0 }
  0xc8   : > { %435 = vadd.xlane.f32.xlu1 %v434_v40  ;;  %v520_v40 = vsel %vm245_vm0, %v482_v32, 0.0  ;;  %v2782_v32 = vld [vmem:[%s2473_s30 + $0x1b8] sm:$0xff] }
  0xc9   : > { %432 = vadd.xlane.f32.xlu0 %v431_v41  ;;  %v517_v41 = vsel %vm245_vm0, %v481_v33, 0.0  ;;  %3536 = vst [vmem:[#allocation11_spill] sm:$0xff] %v2782_v32  ;;  %v2785_v33 = vld [vmem:[%s2473_s30 + $0x1a8] sm:$0xff] }
  0xcc   : > { %280 = vadd.xlane.f32.xlu1 %v279_v46 }
  0xcd   : > { %277 = vadd.xlane.f32.xlu0 %v276_v47  ;;  %v2717_v54 = vpop.xlane.xlu1 %408 }
  0xce   : > { %v2719_v55 = vpop.xlane.xlu0 %247 }
  0xd0   : > { %441 = vadd.xlane.f32.xlu1 %v440_v56  ;;  %v641_v56 = vmul.f32 %v1869_v18, %v1869_v18  ;;  %v756_v18 = vsel %vm245_vm0, %v2766_v6, 0.0 }
  0xd1   : > { %438 = vadd.xlane.f32.xlu0 %v437_v57  ;;  %v2723_v60 = vpop.xlane.xlu1 %411  ;;  %v640_v57 = vmul.f32 %v1868_v19, %v1868_v19  ;;  %v753_v19 = vsel %vm245_vm0, %v2769_v7, 0.0 }
  0xd2   : > { %v2725_v61 = vpop.xlane.xlu0 %250 }
  0xd4   : > { %354 = vadd.xlane.f32.xlu1 %v353_v62  ;;  %v675_v62 = vsel %vm245_vm0, %v641_v56, 0.0 }
  0xd5   : > { %351 = vadd.xlane.f32.xlu0 %v350_v63  ;;  %v2729_v10 = vpop.xlane.xlu1 %256  ;;  %v672_v63 = vsel %vm245_vm0, %v640_v57, 0.0 }
  0xd6   : > { %v2731_v11 = vpop.xlane.xlu0 %253 }
  0xd8   : > { %515 = vadd.xlane.f32.xlu1 %v514_v14 }
  0xd9   : > { %512 = vadd.xlane.f32.xlu0 %v511_v15  ;;  %v2737_v20 = vpop.xlane.xlu1 %417 }
  0xda   : > { %v2739_v21 = vpop.xlane.xlu0 %414 }
  0xdc   : > { %596 = vadd.xlane.f32.xlu1 %v595_v22  ;;  %v643_v22 = vmul.f32 %v1871_v42, %v1871_v42  ;;  %v762_v42 = vsel %vm245_vm0, %v2782_v32, 0.0 }
  0xdd   : > { %593 = vadd.xlane.f32.xlu0 %v592_v23  ;;  %v2743_v28 = vpop.xlane.xlu1 %330  ;;  %v642_v23 = vmul.f32 %v1870_v43, %v1870_v43  ;;  %v759_v43 = vsel %vm245_vm0, %v2785_v33, 0.0 }
  0xde   : > { %v2745_v29 = vpop.xlane.xlu0 %327 }
  0xe0   : > { %360 = vadd.xlane.f32.xlu1 %v359_v30  ;;  %v681_v30 = vsel %vm245_vm0, %v643_v22, 0.0  ;;  %v455_v22 = vadd.f32 %v2717_v54, %v2719_v55  ;;  %v457_v54 = vadd.f32 %v2739_v21, %v2731_v11 }
  0xe1   : > { %357 = vadd.xlane.f32.xlu0 %v356_v31  ;;  %v2749_v38 = vpop.xlane.xlu1 %491  ;;  %v678_v31 = vsel %vm245_vm0, %v642_v23, 0.0  ;;  %v456_v23 = vadd.f32 %v2723_v60, %v2725_v61 }
  0xe2   : > { %v2751_v39 = vpop.xlane.xlu0 %488  ;;  %v536_v11 = vadd.f32 %v2749_v38, %v2743_v28 }
  0xe3   : > { %v535_v21 = vadd.f32 %v2751_v39, %v2745_v29 }
  0xe4   : > { %521 = vadd.xlane.f32.xlu1 %v520_v40 }
  0xe5   : > { %518 = vadd.xlane.f32.xlu0 %v517_v41  ;;  %v573_v46 = vpop.xlane.xlu1 %572 }
  0xe6   : > { %v570_v47 = vpop.xlane.xlu0 %569 }
  0xe8   : > { %602 = vadd.xlane.f32.xlu1 %v601_v48  ;;  %v802_v48 = vmul.f32 %v2766_v6, %v2766_v6 }
  0xe9   : > { %599 = vadd.xlane.f32.xlu0 %v598_v49  ;;  %v2759_v58 = vpop.xlane.xlu1 %336  ;;  %v801_v49 = vmul.f32 %v2769_v7, %v2769_v7 }
  0xea   : > { %v2761_v59 = vpop.xlane.xlu0 %333 }
  0xec   : > { %676 = vadd.xlane.f32.xlu1 %v675_v62  ;;  %v836_v62 = vsel %vm245_vm0, %v802_v48, 0.0  ;;  %v242_v48 = vld [vmem:[%s2473_s30 + $0x150] sm:$0xff] }
  0xed   : > { %673 = vadd.xlane.f32.xlu0 %v672_v63  ;;  %v2771_v14 = vpop.xlane.xlu1 %497  ;;  %v833_v63 = vsel %vm245_vm0, %v801_v49, 0.0  ;;  %v2809_v49 = vld [vmem:[%s2473_s30 + $0x140] sm:$0xff] }
  0xee   : > { %v2773_v15 = vpop.xlane.xlu0 %494 }
  0xf0   : > { %757 = vadd.xlane.f32.xlu1 %v756_v18  ;;  %v804_v18 = vmul.f32 %v2782_v32, %v2782_v32  ;;  %v617_v32 = vadd.f32 %v573_v46, %v456_v23  ;;  %v282_v46 = vsel %vm245_vm0, %v2809_v49, 0.0 }
  0xf1   : > { %754 = vadd.xlane.f32.xlu0 %v753_v19  ;;  %v579_v26 = vpop.xlane.xlu1 %578  ;;  %v803_v19 = vmul.f32 %v2785_v33, %v2785_v33 }
  0xf2   : > { %v576_v27 = vpop.xlane.xlu0 %575 }
  0xf4   : > { %682 = vadd.xlane.f32.xlu1 %v681_v30 }
  0xf5   : > { %679 = vadd.xlane.f32.xlu0 %v678_v31  ;;  %v653_v40 = vpop.xlane.xlu1 %652 }
  0xf6   : > { %v650_v41 = vpop.xlane.xlu0 %649 }
  0xf8   : > { %763 = vadd.xlane.f32.xlu1 %v762_v42  ;;  %v842_v42 = vsel %vm245_vm0, %v804_v18, 0.0 }
  0xf9   : > { %760 = vadd.xlane.f32.xlu0 %v759_v43  ;;  %v734_v56 = vpop.xlane.xlu1 %733  ;;  %v839_v43 = vsel %vm245_vm0, %v803_v19, 0.0  ;;  %v285_v19 = vsel %vm245_vm0, %v242_v48, 0.0 }
  0xfa   : > { %v731_v57 = vpop.xlane.xlu0 %730  ;;  %v778_v55 = vadd.f32 %v734_v56, %v617_v32 }
  0xfc   : > { %837 = vadd.xlane.f32.xlu1 %v836_v62  ;;  %v616_v62 = vadd.f32 %v570_v47, %v455_v22  ;;  %v2819_v47 = vld [vmem:[%s2473_s30 + $0x1d0] sm:$0xff]  ;;  %v2822_v22 = vld [vmem:[%s2473_s30 + $0x1c0] sm:$0xff]  ;;  %v2838_v28 = vmul.f32 0.03125, %v778_v55 }
  0xfd   : > { %834 = vadd.xlane.f32.xlu0 %v833_v63  ;;  %v659_v30 = vpop.xlane.xlu1 %658  ;;  %v458_v63 = vadd.f32 %v2737_v20, %v2729_v10  ;;  %v618_v20 = vadd.f32 %v576_v27, %v457_v54  ;;  %v443_v23 = vsel %vm245_vm0, %v2822_v22, 0.0  ;;  %v697_v27 = vadd.f32 %v653_v40, %v536_v11 }
  0xfe   : > { %v656_v31 = vpop.xlane.xlu0 %655  ;;  %v777_v60 = vadd.f32 %v731_v57, %v616_v62  ;;  %v446_v57 = vsel %vm245_vm0, %v2819_v47, 0.0  ;;  %v538_v62 = vadd.f32 %v2771_v14, %v2759_v58  ;;  %v1859_v58 = vld [vmem:[%s2473_s30 + $0x1f0] sm:$0xff] }
  0xff   : > { %v619_v10 = vadd.f32 %v579_v26, %v458_v63  ;;  %v2836_v26 = vld [vmem:[%s2473_s30 + $0x160] sm:$0xff]  ;;  %v537_v63 = vadd.f32 %v2773_v15, %v2761_v59  ;;  %v906_v59 = vmul.f32 %v2838_v28, %v2838_v28 }
 0x100   : > { %843 = vadd.xlane.f32.xlu1 %v842_v42  ;;  %v2833_v42 = vld [vmem:[%s2473_s30 + $0x170] sm:$0xff]  ;;  %v2840_v29 = vmul.f32 0.03125, %v777_v60  ;;  %v288_v40 = vsel %vm245_vm0, %v2836_v26, 0.0 }
 0x101   : > { %840 = vadd.xlane.f32.xlu0 %v839_v43  ;;  %v740_v61 = vpop.xlane.xlu1 %739  ;;  %v696_v43 = vadd.f32 %v650_v41, %v535_v21  ;;  %v699_v41 = vadd.f32 %v659_v30, %v538_v62  ;;  %v698_v55 = vadd.f32 %v656_v31, %v537_v63  ;;  %v1858_v31 = vld [vmem:[%s2473_s30 + $0x1e0] sm:$0xff] }
 0x102   : > { %v737_v18 = vpop.xlane.xlu0 %736  ;;  %v780_v32 = vadd.f32 %v740_v61, %v619_v10  ;;  %v905_v15 = vmul.f32 %v2840_v29, %v2840_v29 }
 0x103   : > { %v779_v56 = vadd.f32 %v737_v18, %v618_v20  ;;  %v291_v18 = vsel %vm245_vm0, %v2833_v42, 0.0 }
 0x104   : > { %286 = vadd.xlane.f32.xlu1 %v285_v19  ;;  %v2850_v60 = vmul.f32 0.03125, %v780_v32 }
 0x105   : > { %283 = vadd.xlane.f32.xlu0 %v282_v46  ;;  %v814_v38 = vpop.xlane.xlu1 %813  ;;  %v2852_v19 = vmul.f32 0.03125, %v779_v56  ;;  %v452_v56 = vsel %vm245_vm0, %v1859_v58, 0.0 }
 0x106   : > { %v811_v39 = vpop.xlane.xlu0 %810  ;;  %v858_v54 = vadd.f32 %v814_v38, %v697_v27 }
 0x107   : > { %v857_v61 = vadd.f32 %v811_v39, %v696_v43  ;;  %v907_v43 = vmul.f32 %v2852_v19, %v2852_v19 }
 0x108   : > { %447 = vadd.xlane.f32.xlu1 %v446_v57  ;;  %v890_v14 = vmul.f32 0.03125, %v858_v54  ;;  %v323_v57 = vmul.f32 %v242_v48, %v242_v48  ;;  %v322_v48 = vmul.f32 %v2809_v49, %v2809_v49  ;;  %v484_v49 = vmul.f32 %v2819_v47, %v2819_v47  ;;  %v2892_v47 = vld [vmem:[%s2473_s30 + $0x148] sm:$0xff] }
 0x109   : > { %444 = vadd.xlane.f32.xlu0 %v443_v23  ;;  %v889_v46 = vmul.f32 0.03125, %v857_v61  ;;  %v820_v10 = vpop.xlane.xlu1 %819  ;;  %v908_v23 = vmul.f32 %v2850_v60, %v2850_v60  ;;  %v449_v61 = vsel %vm245_vm0, %v1858_v31, 0.0 }
 0x10a   : > { %v817_v20 = vpop.xlane.xlu0 %816  ;;  %v860_v11 = vadd.f32 %v820_v10, %v699_v41  ;;  %v922_v21 = vsub.f32 %v890_v14, %v906_v59 }
 0x10b   : > { %v859_v30 = vadd.f32 %v817_v20, %v698_v55  ;;  %v921_v32 = vsub.f32 %v889_v46, %v905_v15  ;;  %v362_v20 = vsel %vm245_vm0, %v322_v48, 0.0  ;;  %v604_v48 = vsel %vm245_vm0, %v2892_v47, 0.0 }
 0x10c   : > { %v892_v27 = vmul.f32 0.03125, %v860_v11  ;;  %292 = vadd.xlane.f32.xlu1 %v291_v18  ;;  %v938_v39 = vmax.f32 %v922_v21, 0.0  ;;  %v365_v18 = vsel %vm245_vm0, %v323_v57, 0.0  ;;  %v483_v11 = vmul.f32 %v2822_v22, %v2822_v22 }
 0x10d   : > { %v891_v38 = vmul.f32 0.03125, %v859_v30  ;;  %289 = vadd.xlane.f32.xlu0 %v288_v40  ;;  %v937_v62 = vmax.f32 %v921_v32, 0.0  ;;  %v2865_v63 = vpop.xlane.xlu1 %262  ;;  %v526_v57 = vsel %vm245_vm0, %v484_v49, 0.0  ;;  %v325_v22 = vmul.f32 %v2833_v42, %v2833_v42 }
 0x10e   : > { %v2867_v54 = vpop.xlane.xlu0 %259  ;;  %v924_v41 = vsub.f32 %v892_v27, %v908_v23  ;;  %v954_v14 = vadd.f32 1e-05, %v938_v39  ;;  %v523_v23 = vsel %vm245_vm0, %v483_v11, 0.0  ;;  %v2889_v27 = vld [vmem:[%s2473_s30 + $0x158] sm:$0xff]  ;;  %v1500_v11 = vsub.f32 %v2590_v52, %v2850_v60 }
 0x10f   : > { %v923_v55 = vsub.f32 %v891_v38, %v907_v43  ;;  %v953_v59 = vadd.f32 1e-05, %v937_v62  ;;  %v324_v43 = vmul.f32 %v2836_v26, %v2836_v26  ;;  %v486_v38 = vmul.f32 %v1859_v58, %v1859_v58 }
 0x110   : > { %v940_v15 = vmax.f32 %v924_v41, 0.0  ;;  %453 = vadd.xlane.f32.xlu1 %v452_v56  ;;  %2126 = vrsqrt.f32 %v954_v14  ;;  %v371_v41 = vsel %vm245_vm0, %v325_v22, 0.0  ;;  %v2910_v26 = vmul.f32 %v2889_v27, %v2889_v27 }
 0x111   : > { %v939_v46 = vmax.f32 %v923_v55, 0.0  ;;  %450 = vadd.xlane.f32.xlu0 %v449_v61  ;;  %v2873_v40 = vpop.xlane.xlu1 %423  ;;  %2128 = vrsqrt.f32 %v953_v59  ;;  %v607_v61 = vsel %vm245_vm0, %v2889_v27, 0.0  ;;  %v368_v42 = vsel %vm245_vm0, %v324_v43, 0.0 }
 0x112   : > { %v2875_v10 = vpop.xlane.xlu0 %420  ;;  %v956_v30 = vadd.f32 1e-05, %v940_v15  ;;  %v485_v55 = vmul.f32 %v1858_v31, %v1858_v31  ;;  %v1026_v58 = vsub.f32 %v2484_v0, %v2840_v29  ;;  %v1027_v14 = vsub.f32 %v2490_v2, %v2838_v28 }
 0x113   : > { %v955_v21 = vadd.f32 1e-05, %v939_v46  ;;  %v985_v59 = vsub.f32 %v2487_v1, %v2840_v29  ;;  %v532_v15 = vsel %vm245_vm0, %v486_v38, 0.0  ;;  %v1317_v0 = vsub.f32 %v2536_v24, %v2838_v28 }
 0x114   : > { %2130 = vrsqrt.f32 %v956_v30  ;;  %366 = vadd.xlane.f32.xlu1 %v365_v18  ;;  %v986_v18 = vsub.f32 %v2497_v5, %v2838_v28  ;;  %v1498_v2 = vsub.f32 %v2574_v44, %v2838_v28  ;;  %v1319_v1 = vsub.f32 %v2558_v36, %v2850_v60 }
 0x115   : > { %363 = vadd.xlane.f32.xlu0 %v362_v20  ;;  %2132 = vrsqrt.f32 %v955_v21  ;;  %v2882_v32 = vpop.xlane.xlu1 %268  ;;  %v1316_v20 = vsub.f32 %v2539_v25, %v2840_v29  ;;  %v1028_v30 = vsub.f32 %v2517_v13, %v2852_v19  ;;  %v1497_v5 = vsub.f32 %v2577_v45, %v2840_v29 }
 0x116   : > { %v2884_v56 = vpop.xlane.xlu0 %265  ;;  %v529_v52 = vsel %vm245_vm0, %v485_v55, 0.0  ;;  %v1029_v29 = vsub.f32 %v2514_v12, %v2850_v60  ;;  %v987_v43 = vsub.f32 %v2507_v9, %v2852_v19  ;;  %v988_v38 = vsub.f32 %v2504_v8, %v2850_v60 }
 0x118   : > { %527 = vadd.xlane.f32.xlu1 %v526_v57 }
 0x119   : > { %524 = vadd.xlane.f32.xlu0 %v523_v23  ;;  %v2898_v39 = vpop.xlane.xlu1 %429 }
 0x11a   : > { %v2900_v62 = vpop.xlane.xlu0 %426  ;;  %v462_v8 = vadd.f32 %v2898_v39, %v2882_v32 }
 0x11c   : > { %608 = vadd.xlane.f32.xlu1 %v607_v61 }
 0x11d   : > { %605 = vadd.xlane.f32.xlu0 %v604_v48  ;;  %v2919_v46 = vpop.xlane.xlu1 %342  ;;  %v2127_v49 = vpop.eup %2126 }
 0x11e   : > { %v2921_v31 = vpop.xlane.xlu0 %339  ;;  %v2129_v25 = vpop.eup %2128  ;;  %v1043_v21 = vmul.f32 %v2127_v49, %v1027_v14  ;;  %v1002_v57 = vmul.f32 %v2127_v49, %v986_v18  ;;  %v2939_v24 = vmul.f32 %v2127_v49, %v1317_v0  ;;  %v2941_v23 = vmul.f32 %v2127_v49, %v1498_v2  ;;  %v2963_v14 = vld [vmem:[%s2473_s30 + $0x178] sm:$0xff] }
 0x11f   : > { %v1042_v44 = vmul.f32 %v2129_v25, %v1026_v58  ;;  %v1001_v36 = vmul.f32 %v2129_v25, %v985_v59  ;;  %v2944_v28 = vmul.f32 %v2129_v25, %v1316_v20  ;;  %v2956_v61 = vmul.f32 %v2129_v25, %v1497_v5  ;;  %3537 = vst [vmem:[#allocation12_spill] sm:$0xff] %v2963_v14  ;;  %v2966_v20 = vld [vmem:[%s2473_s30 + $0x168] sm:$0xff] }
 0x120   : > { %372 = vadd.xlane.f32.xlu1 %v371_v41  ;;  %v1318_v41 = vsub.f32 %v2561_v37, %v2852_v19  ;;  %v613_v49 = vsel %vm245_vm0, %v2963_v14, 0.0  ;;  %v610_v5 = vsel %vm245_vm0, %v2966_v20, 0.0  ;;  %v644_v25 = vmul.f32 %v2892_v47, %v2892_v47 }
 0x121   : > { %369 = vadd.xlane.f32.xlu0 %v368_v42  ;;  %v2131_v13 = vpop.eup %2130  ;;  %v2946_v22 = vpop.xlane.xlu1 %503  ;;  %v1499_v42 = vsub.f32 %v2593_v53, %v2852_v19  ;;  %v1058_v55 = vpack.c.bf16 %v1043_v21, %v1042_v44  ;;  %v1017_v58 = vpack.c.bf16 %v1002_v57, %v1001_v36 }
 0x122   : > { %v2948_v45 = vpop.xlane.xlu0 %500  ;;  %v2133_v48 = vpop.eup %2132  ;;  %v1045_v59 = vmul.f32 %v2131_v13, %v1029_v29  ;;  %v1004_v9 = vmul.f32 %v2131_v13, %v988_v38  ;;  %v3005_v29 = vld [vmem:[%s2473_s30 + $0x1c8] sm:$0xff] }
 0x123   : > { %v1044_v12 = vmul.f32 %v2133_v48, %v1028_v30  ;;  %v1003_v18 = vmul.f32 %v2133_v48, %v987_v43  ;;  %1973 = vmatprep.mubr.msk.bf16.mxu0 %vm245_vm0, %v1058_v55  ;;  %1991 = vmatprep.mubr.msk.bf16.mxu1 %vm245_vm0, %v1017_v58  ;;  %v2974_v53 = vmul.f32 %v2133_v48, %v1318_v41  ;;  %v765_v41 = vsel %vm245_vm0, %v3005_v29, 0.0 }
 0x124   : > { %533 = vadd.xlane.f32.xlu1 %v532_v15  ;;  %v2978_v30 = vmul.f32 %v2131_v13, %v1319_v1  ;;  %v2984_v21 = vmul.f32 %v2133_v48, %v1499_v42  ;;  %v2986_v15 = vmul.f32 %v2131_v13, %v1500_v11  ;;  %v687_v11 = vsel %vm245_vm0, %v2910_v26, 0.0  ;;  %v3002_v13 = vld [vmem:[%s2473_s30 + $0x1d8] sm:$0xff] }
 0x125   : > { %530 = vadd.xlane.f32.xlu0 %v529_v52  ;;  %v585_v60 = vpop.xlane.xlu1 %584  ;;  %v1059_v0 = vpack.c.bf16 %v1045_v59, %v1044_v12  ;;  %v1018_v2 = vpack.c.bf16 %v1004_v9, %v1003_v18  ;;  %v684_v52 = vsel %vm245_vm0, %v644_v25, 0.0  ;;  %v768_v48 = vsel %vm245_vm0, %v3002_v13, 0.0  ;;  %v3018_v18 = vld [vmem:[%s2473_s30 + $0x1f8] sm:$0xff]  ;;  %v3021_v9 = vld [vmem:[%s2473_s30 + $0x1e8] sm:$0xff] }
 0x126   : > { %v582_v19 = vpop.xlane.xlu0 %581  ;;  %v647_v26 = vmul.f32 %v2963_v14, %v2963_v14  ;;  %v646_v42 = vmul.f32 %v2966_v20, %v2966_v20  ;;  %3538 = vst [vmem:[#allocation13_spill] sm:$0xff] %v3018_v18  ;;  %3539 = vst [vmem:[#allocation14_spill] sm:$0xff] %v3021_v9  ;;  %v806_v25 = vmul.f32 %v3002_v13, %v3002_v13 }
 0x127   : > { %1974 = vmatmul.mubr.msk.bf16.vlgmr.msra.gmra.mxu0 %vm245_vm0, %v1059_v0  ;;  %1992 = vmatmul.mubr.msk.bf16.vlgmr.msra.gmra.mxu1 %vm245_vm0, %v1018_v2  ;;  %v459_v1 = vadd.f32 %v2875_v10, %v2867_v54 }
 0x128   : > { %614 = vadd.xlane.f32.xlu1 %v613_v49  ;;  %v693_v12 = vsel %vm245_vm0, %v647_v26, 0.0  ;;  %v690_v59 = vsel %vm245_vm0, %v646_v42, 0.0  ;;  %v774_v49 = vsel %vm245_vm0, %v3018_v18, 0.0  ;;  %v808_v42 = vmul.f32 %v3018_v18, %v3018_v18 }
 0x129   : > { %611 = vadd.xlane.f32.xlu0 %v610_v5  ;;  %v2994_v44 = vpop.xlane.xlu1 %348  ;;  %v771_v5 = vsel %vm245_vm0, %v3021_v9, 0.0  ;;  %v461_v18 = vadd.f32 %v2900_v62, %v2884_v56 }
 0x12a   : > { %v2996_v36 = vpop.xlane.xlu0 %345 }
 0x12c   : > { %688 = vadd.xlane.f32.xlu1 %v687_v11  ;;  %v805_v11 = vmul.f32 %v3005_v29, %v3005_v29 }
 0x12d   : > { %685 = vadd.xlane.f32.xlu0 %v684_v52  ;;  %v510_v43 = vpop.xlane.xlu1 %509 }
 0x12e   : > { %v507_v38 = vpop.xlane.xlu0 %506  ;;  %v845_v26 = vsel %vm245_vm0, %v805_v11, 0.0  ;;  %v854_v11 = vsel %vm245_vm0, %v808_v42, 0.0  ;;  %v542_v62 = vadd.f32 %v510_v43, %v2994_v44 }
 0x130   : > { %769 = vadd.xlane.f32.xlu1 %v768_v48 }
 0x131   : > { %766 = vadd.xlane.f32.xlu0 %v765_v41  ;;  %v591_v55 = vpop.xlane.xlu1 %590  ;;  %v848_v41 = vsel %vm245_vm0, %v806_v25, 0.0  ;;  %v620_v25 = vadd.f32 %v582_v19, %v459_v1  ;;  %v539_v19 = vadd.f32 %v2948_v45, %v2921_v31 }
 0x132   : > { %v588_v58 = vpop.xlane.xlu0 %587 }
 0x133   : > { %v622_v54 = vadd.f32 %v588_v58, %v461_v18 }
 0x134   : > { %694 = vadd.xlane.f32.xlu1 %v693_v12  ;;  %v807_v12 = vmul.f32 %v3021_v9, %v3021_v9  ;;  %v623_v9 = vadd.f32 %v591_v55, %v462_v8  ;;  %v541_v8 = vadd.f32 %v507_v38, %v2996_v36 }
 0x135   : > { %691 = vadd.xlane.f32.xlu0 %v690_v59  ;;  %v665_v0 = vpop.xlane.xlu1 %664  ;;  %v460_v59 = vadd.f32 %v2873_v40, %v2865_v63 }
 0x136   : > { %v662_v2 = vpop.xlane.xlu0 %661  ;;  %v851_v37 = vsel %vm245_vm0, %v807_v12, 0.0 }
 0x137   : > { %v621_v57 = vadd.f32 %v585_v60, %v460_v59  ;;  %v540_v60 = vadd.f32 %v2946_v22, %v2919_v46  ;;  %v700_v39 = vadd.f32 %v662_v2, %v539_v19 }
 0x138   : > { %775 = vadd.xlane.f32.xlu1 %v774_v49 }
 0x139   : > { %772 = vadd.xlane.f32.xlu0 %v771_v5  ;;  %v746_v52 = vpop.xlane.xlu1 %745  ;;  %v701_v32 = vadd.f32 %v665_v0, %v540_v60 }
 0x13a   : > { %v743_v48 = vpop.xlane.xlu0 %742  ;;  %v782_v63 = vadd.f32 %v746_v52, %v621_v57 }
 0x13b   : > { %v781_v40 = vadd.f32 %v743_v48, %v620_v25 }
 0x13c   : > { %849 = vadd.xlane.f32.xlu1 %v848_v41  ;;  %v3051_v42 = vmul.f32 0.03125, %v782_v63 }
 0x13d   : > { %846 = vadd.xlane.f32.xlu0 %v845_v26  ;;  %v671_v49 = vpop.xlane.xlu1 %670  ;;  %v3053_v56 = vmul.f32 0.03125, %v781_v40 }
 0x13e   : > { %v668_v5 = vpop.xlane.xlu0 %667  ;;  %v703_v46 = vadd.f32 %v671_v49, %v542_v62  ;;  %v910_v45 = vmul.f32 %v3051_v42, %v3051_v42 }
 0x13f   : > { %v702_v22 = vadd.f32 %v668_v5, %v541_v8  ;;  %v909_v0 = vmul.f32 %v3053_v56, %v3053_v56 }
 0x140   : > { %855 = vadd.xlane.f32.xlu1 %v854_v11 }
 0x141   : > { %852 = vadd.xlane.f32.xlu0 %v851_v37  ;;  %v752_v10 = vpop.xlane.xlu1 %751 }
 0x142   : > { %v749_v41 = vpop.xlane.xlu0 %748  ;;  %v784_v1 = vadd.f32 %v752_v10, %v623_v9 }
 0x143   : > { %v783_v26 = vadd.f32 %v749_v41, %v622_v54 }
 0x144   : > { %v3057_v18 = vmul.f32 0.03125, %v784_v1 }
 0x145   : > { %v826_v37 = vpop.xlane.xlu1 %825  ;;  %v3059_v31 = vmul.f32 0.03125, %v783_v26 }
 0x146   : > { %v823_v57 = vpop.xlane.xlu0 %822  ;;  %v862_v55 = vadd.f32 %v826_v37, %v701_v32  ;;  %v912_v12 = vmul.f32 %v3057_v18, %v3057_v18 }
 0x147   : > { %v861_v58 = vadd.f32 %v823_v57, %v700_v39  ;;  %v911_v59 = vmul.f32 %v3059_v31, %v3059_v31  ;;  %v1356_v57 = vld [vmem:[#allocation5 + $0x8] sm:$0xf] }
 0x148   : > { %v894_v9 = vmul.f32 0.03125, %v862_v55  ;;  %v1537_v55 = vld [vmem:[#allocation5 + $0xc] sm:$0xf]  ;;  %2045 = vmatprep.subr.msk.bf16.mxu0 %vm1091_vm1, %v1356_v57 }
 0x149   : > { %v893_v44 = vmul.f32 0.03125, %v861_v58  ;;  %v832_v43 = vpop.xlane.xlu1 %831  ;;  %v1382_v58 = vsel %vm1091_vm1, %v1356_v57, 0  ;;  %2046 = vmatprep.subr.msk.bf16.mxu1 %vm1091_vm1, %v1537_v55 }
 0x14a   : > { %v829_v36 = vpop.xlane.xlu0 %828  ;;  %v926_v38 = vsub.f32 %v894_v9, %v910_v45  ;;  %v864_v52 = vadd.f32 %v832_v43, %v703_v46  ;;  %v1563_v46 = vsel %vm1091_vm1, %v1537_v55, 0  ;;  %2008 = vmatpush3.bf16.msra.mxu0 %v1382_v58  ;;  %v2158_v9 = vld [vmem:[%s2473_s30 + $0xc0] sm:$0xff] }
 0x14b   : > { %v925_v2 = vsub.f32 %v893_v44, %v909_v0  ;;  %v863_v48 = vadd.f32 %v829_v36, %v702_v22  ;;  %2026 = vmatpush3.bf16.msra.mxu1 %v1563_v46  ;;  %v1030_v0 = vsub.f32 %v2158_v9, %v3053_v56  ;;  %v2159_v44 = vld [vmem:[%s2473_s30 + $0xd0] sm:$0xff]  ;;  %v2160_v36 = vld [vmem:[%s2473_s30 + $0x40] sm:$0xff] }
 0x14c   : > { %v942_v49 = vmax.f32 %v926_v38, 0.0  ;;  %v896_v25 = vmul.f32 0.03125, %v864_v52  ;;  %v1031_v43 = vsub.f32 %v2159_v44, %v3051_v42  ;;  %v989_v38 = vsub.f32 %v2160_v36, %v3053_v56  ;;  %v2164_v58 = vld [vmem:[%s2473_s30 + $0x60] sm:$0xff] }
 0x14d   : > { %v941_v5 = vmax.f32 %v925_v2, 0.0  ;;  %v895_v11 = vmul.f32 0.03125, %v863_v48  ;;  %v3069_v63 = vpop.xlane.xlu1 %274  ;;  %v2161_v2 = vld [vmem:[%s2473_s30 + $0x50] sm:$0xff]  ;;  %v1321_v48 = vsub.f32 %v2632_v34, %v3051_v42  ;;  %v1501_v34 = vsub.f32 %v2669_v4, %v3053_v56 }
 0x14e   : > { %v3071_v40 = vpop.xlane.xlu0 %271  ;;  %v958_v54 = vadd.f32 1e-05, %v942_v49  ;;  %v928_v41 = vsub.f32 %v896_v25, %v912_v12  ;;  %v990_v52 = vsub.f32 %v2161_v2, %v3051_v42  ;;  %v1502_v12 = vsub.f32 %v2666_v3, %v3051_v42  ;;  %v2162_v25 = vld [vmem:[%s2473_s30 + $0xe0] sm:$0xff] }
 0x14f   : > { %v957_v10 = vadd.f32 1e-05, %v941_v5  ;;  %v927_v60 = vsub.f32 %v895_v11, %v911_v59  ;;  %v1032_v11 = vsub.f32 %v2162_v25, %v3059_v31  ;;  %v991_v46 = vsub.f32 %v2164_v58, %v3059_v31 }
 0x150   : > { %2134 = vrsqrt.f32 %v958_v54  ;;  %v944_v19 = vmax.f32 %v928_v41, 0.0  ;;  %v2163_v54 = vld [vmem:[%s2473_s30 + $0xf0] sm:$0xff]  ;;  %v1320_v41 = vsub.f32 %v2635_v35, %v3053_v56  ;;  %v1322_v4 = vsub.f32 %v2649_v51, %v3059_v31 }
 0x151   : > { %v943_v1 = vmax.f32 %v927_v60, 0.0  ;;  %2136 = vrsqrt.f32 %v957_v10  ;;  %v3073_v26 = vpop.xlane.xlu1 %435  ;;  %v1033_v10 = vsub.f32 %v2163_v54, %v3057_v18  ;;  %v2165_v35 = vld [vmem:[%s2473_s30 + $0x70] sm:$0xff]  ;;  %v1323_v56 = vsub.f32 %v2646_v50, %v3057_v18 }
 0x152   : > { %v3075_v32 = vpop.xlane.xlu0 %432  ;;  %v960_v39 = vadd.f32 1e-05, %v944_v19  ;;  %v992_v9 = vsub.f32 %v2165_v35, %v3057_v18  ;;  %v1503_v51 = vsub.f32 %v2685_v17, %v3059_v31  ;;  %v1504_v50 = vsub.f32 %v2682_v16, %v3057_v18 }
 0x153   : > { %v959_v62 = vadd.f32 1e-05, %v943_v1 }
 0x154   : > { %2138 = vrsqrt.f32 %v960_v39 }
 0x155   : > { %2140 = vrsqrt.f32 %v959_v62  ;;  %v3077_v8 = vpop.xlane.xlu1 %280 }
 0x156   : > { %v3079_v37 = vpop.xlane.xlu0 %277 }
 0x159   : > { %v3085_v22 = vpop.xlane.xlu1 %441 }
 0x15a   : > { %v3087_v45 = vpop.xlane.xlu0 %438 }
 0x15d   : > { %v2135_v59 = vpop.eup %2134  ;;  %v3101_v49 = vpop.xlane.xlu1 %354 }
 0x15e   : > { %v3103_v5 = vpop.xlane.xlu0 %351  ;;  %v2137_v3 = vpop.eup %2136  ;;  %v1047_v42 = vmul.f32 %v2135_v59, %v1031_v43  ;;  %v1006_v60 = vmul.f32 %v2135_v59, %v990_v52  ;;  %v3113_v19 = vmul.f32 %v2135_v59, %v1321_v48  ;;  %v3115_v1 = vmul.f32 %v2135_v59, %v1502_v12 }
 0x15f   : > { %v1046_v39 = vmul.f32 %v2137_v3, %v1030_v0  ;;  %v1005_v62 = vmul.f32 %v2137_v3, %v989_v38  ;;  %v3117_v57 = vmul.f32 %v2137_v3, %v1320_v41  ;;  %v3119_v55 = vmul.f32 %v2137_v3, %v1501_v34 }
 0x161   : > { %v2139_v44 = vpop.eup %2138  ;;  %v516_v43 = vpop.xlane.xlu1 %515  ;;  %v1060_v36 = vpack.c.bf16 %v1047_v42, %v1046_v39  ;;  %v1019_v38 = vpack.c.bf16 %v1006_v60, %v1005_v62 }
 0x162   : > { %v513_v0 = vpop.xlane.xlu0 %512  ;;  %v2141_v48 = vpop.eup %2140  ;;  %v1049_v12 = vmul.f32 %v2139_v44, %v1033_v10  ;;  %v1008_v59 = vmul.f32 %v2139_v44, %v992_v9  ;;  %v3141_v34 = vmul.f32 %v2139_v44, %v1323_v56  ;;  %v3145_v10 = vmul.f32 %v2139_v44, %v1504_v50 }
 0x163   : > { %1977 = vmatprep.mubr.msk.bf16.mxu0 %vm245_vm0, %v1060_v36  ;;  %1995 = vmatprep.mubr.msk.bf16.mxu1 %vm245_vm0, %v1019_v38  ;;  %v1048_v25 = vmul.f32 %v2141_v48, %v1032_v11  ;;  %v1007_v54 = vmul.f32 %v2141_v48, %v991_v46  ;;  %v3139_v41 = vmul.f32 %v2141_v48, %v1322_v4 }
 0x164   : > { %v3143_v3 = vmul.f32 %v2141_v48, %v1503_v51  ;;  %v464_v36 = vadd.f32 %v3073_v26, %v3069_v63  ;;  %v463_v38 = vadd.f32 %v3075_v32, %v3071_v40  ;;  %v466_v50 = vadd.f32 %v3085_v22, %v3077_v8 }
 0x165   : > { %v597_v42 = vpop.xlane.xlu1 %596  ;;  %v1061_v17 = vpack.c.bf16 %v1049_v12, %v1048_v25  ;;  %v1020_v31 = vpack.c.bf16 %v1008_v59, %v1007_v54  ;;  %v465_v25 = vadd.f32 %v3087_v45, %v3079_v37  ;;  %v544_v63 = vadd.f32 %v516_v43, %v3101_v49 }
 0x166   : > { %v594_v60 = vpop.xlane.xlu0 %593  ;;  %v625_v59 = vadd.f32 %v597_v42, %v464_v36  ;;  %v543_v40 = vadd.f32 %v513_v0, %v3103_v5 }
 0x167   : > { %1978 = vmatmul.mubr.msk.bf16.gmra.mxu0 %vm245_vm0, %v1061_v17  ;;  %1996 = vmatmul.mubr.msk.bf16.gmra.mxu1 %vm245_vm0, %v1020_v31  ;;  %v624_v51 = vadd.f32 %v594_v60, %v463_v38 }
 0x169   : > { %v361_v11 = vpop.xlane.xlu1 %360 }
 0x16a   : > { %v358_v39 = vpop.xlane.xlu0 %357 }
 0x16d   : > { %v522_v62 = vpop.xlane.xlu1 %521 }
 0x16e   : > { %v519_v58 = vpop.xlane.xlu0 %518  ;;  %v546_v22 = vadd.f32 %v522_v62, %v361_v11 }
 0x16f   : > { %v545_v37 = vadd.f32 %v519_v58, %v358_v39 }
 0x171   : > { %v603_v46 = vpop.xlane.xlu1 %602 }
 0x172   : > { %v600_v35 = vpop.xlane.xlu0 %599  ;;  %v627_v31 = vadd.f32 %v603_v46, %v466_v50 }
 0x173   : > { %v626_v18 = vadd.f32 %v600_v35, %v465_v25 }
 0x175   : > { %v677_v9 = vpop.xlane.xlu1 %676 }
 0x176   : > { %v674_v4 = vpop.xlane.xlu0 %673  ;;  %v705_v42 = vadd.f32 %v677_v9, %v544_v63 }
 0x177   : > { %v704_v60 = vadd.f32 %v674_v4, %v543_v40 }
 0x179   : > { %v758_v56 = vpop.xlane.xlu1 %757 }
 0x17a   : > { %v755_v44 = vpop.xlane.xlu0 %754  ;;  %v786_v54 = vadd.f32 %v758_v56, %v625_v59 }
 0x17b   : > { %v785_v17 = vadd.f32 %v755_v44, %v624_v51 }
 0x17c   : > { %v3163_v36 = vmul.f32 0.03125, %v786_v54 }
 0x17d   : > { %v683_v48 = vpop.xlane.xlu1 %682  ;;  %v3165_v8 = vmul.f32 0.03125, %v785_v17 }
 0x17e   : > { %v680_v12 = vpop.xlane.xlu0 %679  ;;  %v707_v44 = vadd.f32 %v683_v48, %v546_v22  ;;  %v914_v5 = vmul.f32 %v3163_v36, %v3163_v36 }
 0x17f   : > { %v706_v38 = vadd.f32 %v680_v12, %v545_v37  ;;  %v913_v0 = vmul.f32 %v3165_v8, %v3165_v8 }
 0x181   : > { %v764_v16 = vpop.xlane.xlu1 %763 }
 0x182   : > { %v761_v52 = vpop.xlane.xlu0 %760  ;;  %v788_v26 = vadd.f32 %v764_v16, %v627_v31 }
 0x183   : > { %v787_v32 = vadd.f32 %v761_v52, %v626_v18 }
 0x184   : > { %v3167_v59 = vmul.f32 0.03125, %v788_v26 }
 0x185   : > { %v838_v45 = vpop.xlane.xlu1 %837  ;;  %v3169_v49 = vmul.f32 0.03125, %v787_v32 }
 0x186   : > { %v835_v56 = vpop.xlane.xlu0 %834  ;;  %v866_v46 = vadd.f32 %v838_v45, %v705_v42  ;;  %v916_v9 = vmul.f32 %v3167_v59, %v3167_v59 }
 0x187   : > { %v865_v35 = vadd.f32 %v835_v56, %v704_v60  ;;  %v915_v4 = vmul.f32 %v3169_v49, %v3169_v49 }
 0x188   : > { %v898_v43 = vmul.f32 0.03125, %v866_v46 }
 0x189   : > { %v897_v52 = vmul.f32 0.03125, %v865_v35  ;;  %v844_v16 = vpop.xlane.xlu1 %843 }
 0x18a   : > { %v841_v18 = vpop.xlane.xlu0 %840  ;;  %v930_v11 = vsub.f32 %v898_v43, %v914_v5  ;;  %v868_v62 = vadd.f32 %v844_v16, %v707_v44  ;;  %v2166_v44 = vld [vmem:[%s2473_s30 + $0x180] sm:$0xff]  ;;  %v2167_v5 = vld [vmem:[%s2473_s30 + $0x190] sm:$0xff] }
 0x18b   : > { %v929_v39 = vsub.f32 %v897_v52, %v913_v0  ;;  %v867_v58 = vadd.f32 %v841_v18, %v706_v38  ;;  %v1034_v38 = vsub.f32 %v2166_v44, %v3165_v8  ;;  %v1035_v43 = vsub.f32 %v2167_v5, %v3163_v36  ;;  %v2168_v0 = vld [vmem:[%s2473_s30 + $0x100] sm:$0xff]  ;;  %v2169_v16 = vld [vmem:[%s2473_s30 + $0x110] sm:$0xff] }
 0x18c   : > { %v946_v48 = vmax.f32 %v930_v11, 0.0  ;;  %v900_v51 = vmul.f32 0.03125, %v868_v62  ;;  %v993_v52 = vsub.f32 %v2168_v0, %v3165_v8  ;;  %v994_v18 = vsub.f32 %v2169_v16, %v3163_v36  ;;  %v2170_v11 = vld [vmem:[%s2473_s30 + $0x118] sm:$0xff]  ;;  %v2174_v0 = vld [vmem:[%s2473_s30 + $0x120] sm:$0xff] }
 0x18d   : > { %v945_v12 = vmax.f32 %v929_v39, 0.0  ;;  %v899_v50 = vmul.f32 0.03125, %v867_v58  ;;  %v3179_v25 = vpop.xlane.xlu1 %286  ;;  %v1325_v39 = vsub.f32 %v2170_v11, %v3163_v36  ;;  %v1506_v62 = vsub.f32 %v2766_v6, %v3163_v36  ;;  %v2175_v11 = vld [vmem:[%s2473_s30 + $0x130] sm:$0xff] }
 0x18e   : > { %v3181_v54 = vpop.xlane.xlu0 %283  ;;  %v962_v17 = vadd.f32 1e-05, %v946_v48  ;;  %v932_v63 = vsub.f32 %v900_v51, %v916_v9  ;;  %v2171_v48 = vld [vmem:[%s2473_s30 + $0x1a0] sm:$0xff]  ;;  %v2172_v51 = vld [vmem:[%s2473_s30 + $0x1b0] sm:$0xff]  ;;  %v1505_v6 = vsub.f32 %v2769_v7, %v3165_v8  ;;  %v995_v16 = vsub.f32 %v2174_v0, %v3169_v49 }
 0x18f   : > { %v961_v31 = vadd.f32 1e-05, %v945_v12  ;;  %v931_v40 = vsub.f32 %v899_v50, %v915_v4  ;;  %v1036_v12 = vsub.f32 %v2171_v48, %v3169_v49  ;;  %v1037_v50 = vsub.f32 %v2172_v51, %v3167_v59 }
 0x190   : > { %2142 = vrsqrt.f32 %v962_v17  ;;  %v948_v26 = vmax.f32 %v932_v63, 0.0  ;;  %v2173_v17 = vld [vmem:[%s2473_s30 + $0x108] sm:$0xff]  ;;  %v996_v7 = vsub.f32 %v2175_v11, %v3167_v59  ;;  %v1507_v0 = vsub.f32 %v2785_v33, %v3169_v49  ;;  %v3540_v11 = vld [vmem:[#allocation11_spill] sm:$0xff] }
 0x191   : > { %v947_v32 = vmax.f32 %v931_v40, 0.0  ;;  %2144 = vrsqrt.f32 %v961_v31  ;;  %v3183_v42 = vpop.xlane.xlu1 %447  ;;  %v1324_v31 = vsub.f32 %v2173_v17, %v3165_v8  ;;  %v2176_v8 = vld [vmem:[%s2473_s30 + $0x128] sm:$0xff] }
 0x192   : > { %v3185_v60 = vpop.xlane.xlu0 %444  ;;  %v964_v22 = vadd.f32 1e-05, %v948_v26 }
 0x193   : > { %v963_v37 = vadd.f32 1e-05, %v947_v32 }
 0x194   : > { %2146 = vrsqrt.f32 %v964_v22 }
 0x195   : > { %2148 = vrsqrt.f32 %v963_v37  ;;  %v3187_v45 = vpop.xlane.xlu1 %292 }
 0x196   : > { %v3189_v56 = vpop.xlane.xlu0 %289 }
 0x199   : > { %v3191_v46 = vpop.xlane.xlu1 %453 }
 0x19a   : > { %v3193_v35 = vpop.xlane.xlu0 %450 }
 0x19d   : > { %v2143_v58 = vpop.eup %2142  ;;  %v3207_v9 = vpop.xlane.xlu1 %366 }
 0x19e   : > { %v3209_v4 = vpop.xlane.xlu0 %363  ;;  %v2145_v36 = vpop.eup %2144  ;;  %v1051_v63 = vmul.f32 %v2143_v58, %v1035_v43  ;;  %v1010_v40 = vmul.f32 %v2143_v58, %v994_v18  ;;  %v3219_v26 = vmul.f32 %v2143_v58, %v1325_v39  ;;  %v3221_v32 = vmul.f32 %v2143_v58, %v1506_v62  ;;  %v2177_v18 = vld [vmem:[%s2473_s30 + $0x138] sm:$0xff] }
 0x19f   : > { %v1050_v22 = vmul.f32 %v2145_v36, %v1034_v38  ;;  %v1009_v37 = vmul.f32 %v2145_v36, %v993_v52  ;;  %v3223_v44 = vmul.f32 %v2145_v36, %v1324_v31  ;;  %v3225_v5 = vmul.f32 %v2145_v36, %v1505_v6 }
 0x1a0   : > { %v1326_v43 = vsub.f32 %v2176_v8, %v3169_v49  ;;  %v1327_v39 = vsub.f32 %v2177_v18, %v3167_v59  ;;  %v1508_v8 = vsub.f32 %v3540_v11, %v3167_v59  ;;  %v468_v11 = vadd.f32 %v3183_v42, %v3179_v25 }
 0x1a1   : > { %v2147_v62 = vpop.eup %2146  ;;  %v528_v58 = vpop.xlane.xlu1 %527  ;;  %v1062_v52 = vpack.c.bf16 %v1051_v63, %v1050_v22  ;;  %v1021_v48 = vpack.c.bf16 %v1010_v40, %v1009_v37  ;;  %v469_v59 = vadd.f32 %v3193_v35, %v3189_v56 }
 0x1a2   : > { %v525_v38 = vpop.xlane.xlu0 %524  ;;  %v2149_v31 = vpop.eup %2148  ;;  %v1053_v6 = vmul.f32 %v2147_v62, %v1037_v50  ;;  %v1012_v36 = vmul.f32 %v2147_v62, %v996_v7  ;;  %v3247_v37 = vmul.f32 %v2147_v62, %v1327_v39  ;;  %v3251_v50 = vmul.f32 %v2147_v62, %v1508_v8 }
 0x1a3   : > { %1981 = vmatprep.mubr.msk.bf16.mxu0 %vm245_vm0, %v1062_v52  ;;  %1999 = vmatprep.mubr.msk.bf16.mxu1 %vm245_vm0, %v1021_v48  ;;  %v1052_v63 = vmul.f32 %v2149_v31, %v1036_v12  ;;  %v1011_v40 = vmul.f32 %v2149_v31, %v995_v16  ;;  %v3245_v22 = vmul.f32 %v2149_v31, %v1326_v43 }
 0x1a4   : > { %v3249_v18 = vmul.f32 %v2149_v31, %v1507_v0  ;;  %3543 = vst [vmem:[#allocation16_spill] sm:$0xff] %v3251_v50  ;;  %v467_v8 = vadd.f32 %v3185_v60, %v3181_v54  ;;  %v470_v52 = vadd.f32 %v3191_v46, %v3187_v45  ;;  %v548_v25 = vadd.f32 %v528_v58, %v3207_v9 }
 0x1a5   : > { %3541 = vst [vmem:[#allocation11_spill] sm:$0xff] %v3245_v22  ;;  %v609_v7 = vpop.xlane.xlu1 %608  ;;  %v1063_v33 = vpack.c.bf16 %v1053_v6, %v1052_v63  ;;  %v1022_v49 = vpack.c.bf16 %v1012_v36, %v1011_v40  ;;  %v547_v54 = vadd.f32 %v525_v38, %v3209_v4 }
 0x1a6   : > { %3542 = vst [vmem:[#allocation15_spill] sm:$0xff] %v3249_v18  ;;  %v606_v17 = vpop.xlane.xlu0 %605 }
 0x1a7   : > { %1982 = vmatmul.mubr.msk.bf16.gmra.mxu0 %vm245_vm0, %v1063_v33  ;;  %2000 = vmatmul.mubr.msk.bf16.gmra.mxu1 %vm245_vm0, %v1022_v49  ;;  %v629_v33 = vadd.f32 %v609_v7, %v468_v11  ;;  %v628_v49 = vadd.f32 %v606_v17, %v467_v8 }
 0x1a9   : > { %v373_v12 = vpop.xlane.xlu1 %372 }
 0x1aa   : > { %v370_v16 = vpop.xlane.xlu0 %369 }
 0x1ad   : > { %v534_v43 = vpop.xlane.xlu1 %533 }
 0x1ae   : > { %v531_v39 = vpop.xlane.xlu0 %530  ;;  %v550_v46 = vadd.f32 %v534_v43, %v373_v12 }
 0x1af   : > { %v549_v56 = vadd.f32 %v531_v39, %v370_v16 }
 0x1b1   : > { %v615_v62 = vpop.xlane.xlu1 %614 }
 0x1b2   : > { %v612_v48 = vpop.xlane.xlu0 %611  ;;  %v631_v14 = vadd.f32 %v615_v62, %v470_v52 }
 0x1b3   : > { %v630_v18 = vadd.f32 %v612_v48, %v469_v59 }
 0x1b5   : > { %v689_v31 = vpop.xlane.xlu1 %688 }
 0x1b6   : > { %v686_v0 = vpop.xlane.xlu0 %685  ;;  %v709_v7 = vadd.f32 %v689_v31, %v548_v25 }
 0x1b7   : > { %v708_v17 = vadd.f32 %v686_v0, %v547_v54 }
 0x1b9   : > { %v770_v6 = vpop.xlane.xlu1 %769 }
 0x1ba   : > { %v767_v36 = vpop.xlane.xlu0 %766  ;;  %v790_v51 = vadd.f32 %v770_v6, %v629_v33 }
 0x1bb   : > { %v789_v2 = vadd.f32 %v767_v36, %v628_v49 }
 0x1bc   : > { %v3269_v11 = vmul.f32 0.03125, %v790_v51 }
 0x1bd   : > { %v695_v63 = vpop.xlane.xlu1 %694  ;;  %v3271_v45 = vmul.f32 0.03125, %v789_v2 }
 0x1be   : > { %v692_v40 = vpop.xlane.xlu0 %691  ;;  %v711_v62 = vadd.f32 %v695_v63, %v550_v46  ;;  %v2179_v46 = vld [vmem:[%s2473_s30 + $0x150] sm:$0xff] }
 0x1bf   : > { %v710_v48 = vadd.f32 %v692_v40, %v549_v56  ;;  %v917_v2 = vmul.f32 %v3271_v45, %v3271_v45  ;;  %v998_v56 = vsub.f32 %v2179_v46, %v3269_v11  ;;  %v3561_v46 = vld [vmem:[#allocation13_spill] sm:$0xff] }
 0x1c1   : > { %v776_v50 = vpop.xlane.xlu1 %775 }
 0x1c2   : > { %v773_v22 = vpop.xlane.xlu0 %772  ;;  %v792_v42 = vadd.f32 %v776_v50, %v631_v14  ;;  %v918_v14 = vmul.f32 %v3269_v11, %v3269_v11 }
 0x1c3   : > { %v791_v60 = vadd.f32 %v773_v22, %v630_v18 }
 0x1c4   : > { %v3273_v36 = vmul.f32 0.03125, %v792_v42 }
 0x1c5   : > { %v850_v35 = vpop.xlane.xlu1 %849  ;;  %v3275_v9 = vmul.f32 0.03125, %v791_v60 }
 0x1c6   : > { %v847_v6 = vpop.xlane.xlu0 %846  ;;  %v870_v52 = vadd.f32 %v850_v35, %v709_v7  ;;  %v920_v16 = vmul.f32 %v3273_v36, %v3273_v36  ;;  %v2178_v7 = vld [vmem:[%s2473_s30 + $0x1d0] sm:$0xff] }
 0x1c7   : > { %v869_v59 = vadd.f32 %v847_v6, %v708_v17  ;;  %v919_v43 = vmul.f32 %v3275_v9, %v3275_v9  ;;  %v1039_v17 = vsub.f32 %v2178_v7, %v3269_v11  ;;  %v2180_v6 = vld [vmem:[%s2473_s30 + $0x1c0] sm:$0xff]  ;;  %v3546_v7 = vpack.c.bf16 %v2978_v30, %v2974_v53 }
 0x1c8   : > { %v902_v4 = vmul.f32 0.03125, %v870_v52  ;;  %v1038_v52 = vsub.f32 %v2180_v6, %v3271_v45  ;;  %v1328_v53 = vsub.f32 %v2892_v47, %v3271_v45  ;;  %v3552_v30 = vpack.c.bf16 %v3219_v26, %v3223_v44  ;;  %v3554_v26 = vld [vmem:[#allocation11_spill] sm:$0xff] }
 0x1c9   : > { %v901_v58 = vmul.f32 0.03125, %v869_v59  ;;  %v856_v38 = vpop.xlane.xlu1 %855  ;;  %v2181_v59 = vld [vmem:[%s2473_s30 + $0x140] sm:$0xff]  ;;  %v3557_v44 = vld [vmem:[#allocation15_spill] sm:$0xff] }
 0x1ca   : > { %v853_v51 = vpop.xlane.xlu0 %852  ;;  %v934_v22 = vsub.f32 %v902_v4, %v918_v14  ;;  %v872_v50 = vadd.f32 %v856_v38, %v711_v62  ;;  %v997_v62 = vsub.f32 %v2181_v59, %v3271_v45  ;;  %v2182_v38 = vld [vmem:[%s2473_s30 + $0x1f0] sm:$0xff] }
 0x1cb   : > { %v933_v18 = vsub.f32 %v901_v58, %v917_v2  ;;  %v871_v12 = vadd.f32 %v853_v51, %v710_v48  ;;  %v1041_v51 = vsub.f32 %v2182_v38, %v3273_v36 }
 0x1cc   : > { %v950_v39 = vmax.f32 %v934_v22, 0.0  ;;  %v904_v0 = vmul.f32 0.03125, %v872_v50  ;;  %v2183_v22 = vld [vmem:[%s2473_s30 + $0x170] sm:$0xff] }
 0x1cd   : > { %v949_v31 = vmax.f32 %v933_v18, 0.0  ;;  %v903_v8 = vmul.f32 0.03125, %v871_v12  ;;  %v1000_v18 = vsub.f32 %v2183_v22, %v3273_v36 }
 0x1ce   : > { %v966_v63 = vadd.f32 1e-05, %v950_v39  ;;  %v936_v33 = vsub.f32 %v904_v0, %v920_v16 }
 0x1cf   : > { %v965_v40 = vadd.f32 1e-05, %v949_v31  ;;  %v935_v49 = vsub.f32 %v903_v8, %v919_v43  ;;  %v2184_v43 = vld [vmem:[%s2473_s30 + $0x1e0] sm:$0xff] }
 0x1d0   : > { %2150 = vrsqrt.f32 %v966_v63  ;;  %v952_v25 = vmax.f32 %v936_v33, 0.0  ;;  %v1040_v39 = vsub.f32 %v2184_v43, %v3275_v9  ;;  %v2185_v31 = vld [vmem:[%s2473_s30 + $0x160] sm:$0xff] }
 0x1d1   : > { %v951_v54 = vmax.f32 %v935_v49, 0.0  ;;  %2152 = vrsqrt.f32 %v965_v40  ;;  %v999_v0 = vsub.f32 %v2185_v31, %v3275_v9 }
 0x1d2   : > { %v968_v42 = vadd.f32 1e-05, %v952_v25 }
 0x1d3   : > { %v967_v60 = vadd.f32 1e-05, %v951_v54 }
 0x1d4   : > { %2154 = vrsqrt.f32 %v968_v42  ;;  %v3544_v42 = vpack.c.bf16 %v2939_v24, %v2944_v28  ;;  %v3548_v24 = vpack.c.bf16 %v3113_v19, %v3117_v57  ;;  %v3550_v28 = vpack.c.bf16 %v3141_v34, %v3139_v41 }
 0x1d5   : > { %2156 = vrsqrt.f32 %v967_v60  ;;  %v3545_v60 = vpack.c.bf16 %v2941_v23, %v2956_v61  ;;  %v3549_v23 = vpack.c.bf16 %v3115_v1, %v3119_v55  ;;  %v3551_v61 = vpack.c.bf16 %v3145_v10, %v3143_v3 }
 0x1d6   : > { %v1509_v19 = vsub.f32 %v3005_v29, %v3271_v45  ;;  %v1510_v1 = vsub.f32 %v3002_v13, %v3269_v11  ;;  %v1330_v10 = vsub.f32 %v2966_v20, %v3275_v9  ;;  %v3559_v13 = vld [vmem:[#allocation12_spill] sm:$0xff] }
 0x1dd   : > { %v2151_v35 = vpop.eup %2150 }
 0x1de   : > { %v2153_v48 = vpop.eup %2152  ;;  %v1055_v14 = vmul.f32 %v2151_v35, %v1039_v17  ;;  %v1014_v4 = vmul.f32 %v2151_v35, %v998_v56  ;;  %v3547_v17 = vpack.c.bf16 %v2986_v15, %v2984_v21  ;;  %v3553_v21 = vpack.c.bf16 %v3221_v32, %v3225_v5 }
 0x1df   : > { %v1054_v2 = vmul.f32 %v2153_v48, %v1038_v52  ;;  %v1013_v58 = vmul.f32 %v2153_v48, %v997_v62  ;;  %v1329_v15 = vsub.f32 %v2889_v27, %v3269_v11  ;;  %v1344_v47 = vmul.f32 %v2153_v48, %v1328_v53  ;;  %v3556_v27 = vld [vmem:[#allocation16_spill] sm:$0xff]  ;;  %v3560_v11 = vld [vmem:[#allocation14_spill] sm:$0xff] }
 0x1e0   : > { %v1525_v55 = vmul.f32 %v2153_v48, %v1509_v19  ;;  %v1526_v41 = vmul.f32 %v2151_v35, %v1510_v1  ;;  %v3555_v32 = vpack.c.bf16 %v3247_v37, %v3554_v26  ;;  %v3558_v29 = vpack.c.bf16 %v3556_v27, %v3557_v44 }
 0x1e1   : > { %v2155_v50 = vpop.eup %2154  ;;  %v1064_v12 = vpack.c.bf16 %v1055_v14, %v1054_v2  ;;  %v1023_v16 = vpack.c.bf16 %v1014_v4, %v1013_v58  ;;  %v1345_v57 = vmul.f32 %v2151_v35, %v1329_v15  ;;  %v1331_v5 = vsub.f32 %v3559_v13, %v3273_v36  ;;  %v3409_v15 = vld [vmem:[%s3517_s2] ss:$0 sm:$0xff] }
 0x1e2   : > { %v2157_v8 = vpop.eup %2156  ;;  %v1057_v63 = vmul.f32 %v2155_v50, %v1041_v51  ;;  %v1016_v40 = vmul.f32 %v2155_v50, %v1000_v18  ;;  %v1535_v3 = vpack.c.bf16 %v1526_v41, %v1525_v55  ;;  %v1511_v45 = vsub.f32 %v3560_v11, %v3275_v9 }
 0x1e3   : > { %1985 = vmatprep.mubr.msk.bf16.mxu0 %vm245_vm0, %v1064_v12  ;;  %2003 = vmatprep.mubr.msk.bf16.mxu1 %vm245_vm0, %v1023_v16  ;;  %v1056_v33 = vmul.f32 %v2157_v8, %v1040_v39  ;;  %v1015_v49 = vmul.f32 %v2157_v8, %v999_v0  ;;  %v1354_v34 = vpack.c.bf16 %v1345_v57, %v1344_v47 }
 0x1e4   : > { %v1512_v56 = vsub.f32 %v3561_v46, %v3273_v36  ;;  %v1346_v20 = vmul.f32 %v2157_v8, %v1330_v10  ;;  %v1347_v37 = vmul.f32 %v2155_v50, %v1331_v5  ;;  %v1527_v35 = vmul.f32 %v2157_v8, %v1511_v45 }
 0x1e5   : > { %v1065_v25 = vpack.c.bf16 %v1057_v63, %v1056_v33  ;;  %v1024_v54 = vpack.c.bf16 %v1016_v40, %v1015_v49 }
 0x1e6   : > { %v1528_v6 = vmul.f32 %v2155_v50, %v1512_v56  ;;  %v1355_v52 = vpack.c.bf16 %v1347_v37, %v1346_v20 }
 0x1e7   : > { %1986 = vmatmul.mubr.msk.bf16.gmra.mxu0 %vm245_vm0, %v1065_v25  ;;  %2004 = vmatmul.mubr.msk.bf16.gmra.mxu1 %vm245_vm0, %v1024_v54  ;;  %v1975_v62 = vpop.f32.mrf.mxu0  ;;  %v1993_v48 = vpop.f32.mrf.mxu1 }
 0x1e8   : > { %2009 = vmatprep.mubr.msk.bf16.mxu0 %vm245_vm0, %v3544_v42  ;;  %2027 = vmatprep.mubr.msk.bf16.mxu1 %vm245_vm0, %v3545_v60  ;;  %v1536_v59 = vpack.c.bf16 %v1528_v6, %v1527_v35 }
 0x1e9   : > { %v1129_v9 = vpop.f32.mrf.mxu0  ;;  %v1253_v14 = vpop.f32.mrf.mxu1 }
 0x1eb   : > { %v1976_v4 = vpop.f32.mrf.mxu0  ;;  %v1994_v36 = vpop.f32.mrf.mxu1 }
 0x1ec   : > { %v1265_v47 = vadd.f32 %v1994_v36, %v1976_v4 }
 0x1ed   : > { %v1132_v2 = vpop.f32.mrf.mxu0  ;;  %v1256_v58 = vpop.f32.mrf.mxu1 }
 0x1ef   : > { %2010 = vmatmul.mubr.msk.bf16.vlgmr.msra.gmra.mxu0 %vm245_vm0, %v3546_v7  ;;  %2028 = vmatmul.mubr.msk.bf16.vlgmr.msra.gmra.mxu1 %vm245_vm0, %v3547_v17 }
 0x1f0   : > { %2013 = vmatprep.mubr.msk.bf16.mxu0 %vm245_vm0, %v3548_v24  ;;  %2031 = vmatprep.mubr.msk.bf16.mxu1 %vm245_vm0, %v3549_v23 }
 0x1f7   : > { %2014 = vmatmul.mubr.msk.bf16.gmra.mxu0 %vm245_vm0, %v3550_v28  ;;  %2032 = vmatmul.mubr.msk.bf16.gmra.mxu1 %vm245_vm0, %v3551_v61  ;;  %v1262_v28 = vadd.f32 %v1993_v48, %v1975_v62 }
 0x1f8   : > { %2017 = vmatprep.mubr.msk.bf16.mxu0 %vm245_vm0, %v3552_v30  ;;  %2035 = vmatprep.mubr.msk.bf16.mxu1 %vm245_vm0, %v3553_v21  ;;  %v1254_v30 = vadd.f32 %v1253_v14, %v1129_v9 }
 0x1ff   : > { %2018 = vmatmul.mubr.msk.bf16.gmra.mxu0 %vm245_vm0, %v3555_v32  ;;  %2036 = vmatmul.mubr.msk.bf16.gmra.mxu1 %vm245_vm0, %v3558_v29 }
 0x200   : > { %2021 = vmatprep.mubr.msk.bf16.mxu0 %vm245_vm0, %v1354_v34  ;;  %2039 = vmatprep.mubr.msk.bf16.mxu1 %vm245_vm0, %v1535_v3  ;;  %v1257_v3 = vadd.f32 %v1256_v58, %v1132_v2 }
 0x207   : > { %2022 = vmatmul.mubr.msk.bf16.gmra.mxu0 %vm245_vm0, %v1355_v52  ;;  %2040 = vmatmul.mubr.msk.bf16.gmra.mxu1 %vm245_vm0, %v1536_v59 }
 0x227   : > { %v1979_v38 = vpop.f32.mrf.mxu0  ;;  %v1997_v51 = vpop.f32.mrf.mxu1 }
 0x228   : > { %v1278_v29 = vadd.f32 %v1997_v51, %v1979_v38 }
 0x229   : > { %v1145_v22 = vpop.f32.mrf.mxu0  ;;  %v1269_v18 = vpop.f32.mrf.mxu1 }
 0x22a   : > { %v1270_v56 = vadd.f32 %v1269_v18, %v1145_v22 }
 0x22b   : > { %v1980_v12 = vpop.f32.mrf.mxu0  ;;  %v1998_v50 = vpop.f32.mrf.mxu1 }
 0x22c   : > { %v1281_v59 = vadd.f32 %v1998_v50, %v1980_v12 }
 0x22d   : > { %v1148_v16 = vpop.f32.mrf.mxu0  ;;  %v1272_v43 = vpop.f32.mrf.mxu1 }
 0x22e   : > { %v1273_v36 = vadd.f32 %v1272_v43, %v1148_v16 }
 0x267   : > { %v3373_v39 = vpop.f32.mrf.mxu0  ;;  %v3375_v31 = vpop.f32.mrf.mxu1 }
 0x268   : > { %v1294_v18 = vadd.f32 %v3375_v31, %v3373_v39 }
 0x269   : > { %v3377_v0 = vpop.f32.mrf.mxu0  ;;  %v3379_v8 = vpop.f32.mrf.mxu1 }
 0x26a   : > { %v1286_v16 = vadd.f32 %v3379_v8, %v3377_v0 }
 0x26b   : > { %v3381_v63 = vpop.f32.mrf.mxu0  ;;  %v3383_v40 = vpop.f32.mrf.mxu1 }
 0x26c   : > { %v1297_v39 = vadd.f32 %v3383_v40, %v3381_v63 }
 0x26d   : > { %v3385_v33 = vpop.f32.mrf.mxu0  ;;  %v3387_v49 = vpop.f32.mrf.mxu1 }
 0x26e   : > { %v1289_v0 = vadd.f32 %v3387_v49, %v3385_v33 }
 0x2a7   : > { %v3389_v25 = vpop.f32.mrf.mxu0  ;;  %v3391_v54 = vpop.f32.mrf.mxu1 }
 0x2a8   : > { %v1310_v63 = vadd.f32 %v3391_v54, %v3389_v25 }
 0x2a9   : > { %v3393_v42 = vpop.f32.mrf.mxu0  ;;  %v3395_v60 = vpop.f32.mrf.mxu1 }
 0x2aa   : > { %v1302_v33 = vadd.f32 %v3395_v60, %v3393_v42 }
 0x2ab   : > { %v3397_v7 = vpop.f32.mrf.mxu0  ;;  %v3399_v17 = vpop.f32.mrf.mxu1 }
 0x2ac   : > { %v1313_v25 = vadd.f32 %v3399_v17, %v3397_v7 }
 0x2ad   : > { %v3401_v24 = vpop.f32.mrf.mxu0  ;;  %v3403_v23 = vpop.f32.mrf.mxu1 }
 0x2af   : > { %v2011_v61 = vpop.f32.mrf.mxu0  ;;  %v2029_v53 = vpop.f32.mrf.mxu1 }
 0x2b0   : > { %v1483_v21 = vadd.f32 %v2011_v61, %v1262_v28 }
 0x2b1   : > { %v1418_v19 = vpop.f32.mrf.mxu0  ;;  %v1599_v1 = vpop.f32.mrf.mxu1 }
 0x2b2   : > { %v1664_v57 = vadd.f32 %v2029_v53, %v1483_v21  ;;  %v1481_v55 = vadd.f32 %v1418_v19, %v1254_v30 }
 0x2b3   : > { %v2012_v41 = vpop.f32.mrf.mxu0  ;;  %v2030_v34 = vpop.f32.mrf.mxu1 }
 0x2b4   : > { %v1687_v10 = vadd.f32 %v3409_v15, %v1664_v57  ;;  %v1662_v26 = vadd.f32 %v1599_v1, %v1481_v55  ;;  %v1484_v32 = vadd.f32 %v2012_v41, %v1265_v47 }
 0x2b5   : > { %v1421_v27 = vpop.f32.mrf.mxu0  ;;  %v1602_v44 = vpop.f32.mrf.mxu1 }
 0x2b6   : > { %1703 = vst [vmem:[%s3412_s29 + $0x10] sm:$0xff] %v1687_v10  ;;  %v1685_v13 = vadd.f32 %v3409_v15, %v1662_v26  ;;  %v1665_v5 = vadd.f32 %v2030_v34, %v1484_v32  ;;  %v1482_v11 = vadd.f32 %v1421_v27, %v1257_v3 }
 0x2b7   : > { %v2015_v45 = vpop.f32.mrf.mxu0  ;;  %v2033_v46 = vpop.f32.mrf.mxu1 }
 0x2b8   : > { %1701 = vst [vmem:[%s3412_s29] sm:$0xff] %v1685_v13  ;;  %v1688_v20 = vadd.f32 %v3409_v15, %v1665_v5  ;;  %v1663_v37 = vadd.f32 %v1602_v44, %v1482_v11  ;;  %v1487_v35 = vadd.f32 %v2015_v45, %v1278_v29 }
 0x2b9   : > { %v1434_v6 = vpop.f32.mrf.mxu0  ;;  %v1615_v52 = vpop.f32.mrf.mxu1 }
 0x2ba   : > { %1704 = vst [vmem:[%s3412_s29 + $0x18] sm:$0xff] %v1688_v20  ;;  %v1686_v62 = vadd.f32 %v3409_v15, %v1663_v37  ;;  %v1668_v48 = vadd.f32 %v2033_v46, %v1487_v35  ;;  %v1485_v9 = vadd.f32 %v1434_v6, %v1270_v56  ;;  %v1305_v20 = vadd.f32 %v3403_v23, %v3401_v24 }
 0x2bb   : > { %v2016_v14 = vpop.f32.mrf.mxu0  ;;  %v2034_v4 = vpop.f32.mrf.mxu1 }
 0x2bc   : > { %1702 = vst [vmem:[%s3412_s29 + $0x8] sm:$0xff] %v1686_v62  ;;  %v1691_v2 = vadd.f32 %v3409_v15, %v1668_v48  ;;  %v1666_v58 = vadd.f32 %v1615_v52, %v1485_v9  ;;  %v1488_v38 = vadd.f32 %v2016_v14, %v1281_v59 }
 0x2bd   : > { %v1437_v51 = vpop.f32.mrf.mxu0  ;;  %v1618_v22 = vpop.f32.mrf.mxu1 }
 0x2be   : > { %1707 = vst [vmem:[%s3412_s29 + $0x30] sm:$0xff] %v1691_v2  ;;  %v1689_v12 = vadd.f32 %v3409_v15, %v1666_v58  ;;  %v1669_v50 = vadd.f32 %v2034_v4, %v1488_v38  ;;  %v1486_v28 = vadd.f32 %v1437_v51, %v1273_v36 }
 0x2bf   : > { %v2019_v61 = vpop.f32.mrf.mxu0  ;;  %v2037_v53 = vpop.f32.mrf.mxu1 }
 0x2c0   : > { %1705 = vst [vmem:[%s3412_s29 + $0x20] sm:$0xff] %v1689_v12  ;;  %v1692_v43 = vadd.f32 %v3409_v15, %v1669_v50  ;;  %v1667_v30 = vadd.f32 %v1618_v22, %v1486_v28  ;;  %v1491_v21 = vadd.f32 %v2019_v61, %v1294_v18 }
 0x2c1   : > { %v1450_v19 = vpop.f32.mrf.mxu0  ;;  %v1631_v1 = vpop.f32.mrf.mxu1 }
 0x2c2   : > { %1708 = vst [vmem:[%s3412_s29 + $0x38] sm:$0xff] %v1692_v43  ;;  %v1690_v31 = vadd.f32 %v3409_v15, %v1667_v30  ;;  %v1672_v47 = vadd.f32 %v2037_v53, %v1491_v21  ;;  %v1489_v57 = vadd.f32 %v1450_v19, %v1286_v16 }
 0x2c3   : > { %v2020_v55 = vpop.f32.mrf.mxu0  ;;  %v2038_v41 = vpop.f32.mrf.mxu1 }
 0x2c4   : > { %1706 = vst [vmem:[%s3412_s29 + $0x28] sm:$0xff] %v1690_v31  ;;  %v1695_v8 = vadd.f32 %v3409_v15, %v1672_v47  ;;  %v1670_v34 = vadd.f32 %v1631_v1, %v1489_v57  ;;  %v1492_v3 = vadd.f32 %v2020_v55, %v1297_v39 }
 0x2c5   : > { %v1453_v10 = vpop.f32.mrf.mxu0  ;;  %v1634_v26 = vpop.f32.mrf.mxu1 }
 0x2c6   : > { %1711 = vst [vmem:[%s3412_s29 + $0x50] sm:$0xff] %v1695_v8  ;;  %v1693_v40 = vadd.f32 %v3409_v15, %v1670_v34  ;;  %v1673_v32 = vadd.f32 %v2038_v41, %v1492_v3  ;;  %v1490_v27 = vadd.f32 %v1453_v10, %v1289_v0 }
 0x2c7   : > { %v2023_v44 = vpop.f32.mrf.mxu0  ;;  %v2041_v29 = vpop.f32.mrf.mxu1 }
 0x2c8   : > { %1709 = vst [vmem:[%s3412_s29 + $0x40] sm:$0xff] %v1693_v40  ;;  %v1696_v49 = vadd.f32 %v3409_v15, %v1673_v32  ;;  %v1671_v13 = vadd.f32 %v1634_v26, %v1490_v27  ;;  %v1495_v5 = vadd.f32 %v2023_v44, %v1310_v63 }
 0x2c9   : > { %v1466_v11 = vpop.f32.mrf.mxu0  ;;  %v1647_v45 = vpop.f32.mrf.mxu1 }
 0x2ca   : > { %1712 = vst [vmem:[%s3412_s29 + $0x58] sm:$0xff] %v1696_v49  ;;  %v1694_v54 = vadd.f32 %v3409_v15, %v1671_v13  ;;  %v1676_v46 = vadd.f32 %v2041_v29, %v1495_v5  ;;  %v1493_v56 = vadd.f32 %v1466_v11, %v1302_v33 }
 0x2cb   : > { %v2024_v42 = vpop.f32.mrf.mxu0  ;;  %v2042_v60 = vpop.f32.mrf.mxu1 }
 0x2cc   : > { %1710 = vst [vmem:[%s3412_s29 + $0x48] sm:$0xff] %v1694_v54  ;;  %v1699_v37 = vadd.f32 %v3409_v15, %v1676_v46  ;;  %v1674_v35 = vadd.f32 %v1647_v45, %v1493_v56  ;;  %v1496_v6 = vadd.f32 %v2024_v42, %v1313_v25 }
 0x2cd   : > { %v1469_v7 = vpop.f32.mrf.mxu0  ;;  %v1650_v62 = vpop.f32.mrf.mxu1 }
 0x2ce   : > { %1715 = vst [vmem:[%s3412_s29 + $0x70] sm:$0xff] %v1699_v37  ;;  %v1697_v17 = vadd.f32 %v3409_v15, %v1674_v35  ;;  %v1677_v52 = vadd.f32 %v2042_v60, %v1496_v6  ;;  %v1494_v59 = vadd.f32 %v1469_v7, %v1305_v20 }
 0x2d0   : > { %1713 = vst [vmem:[%s3412_s29 + $0x60] sm:$0xff] %v1697_v17  ;;  %v1700_v24 = vadd.f32 %v3409_v15, %v1677_v52  ;;  %v1675_v23 = vadd.f32 %v1650_v62, %v1494_v59 }
 0x2d2   : > { %1716 = vst [vmem:[%s3412_s29 + $0x78] sm:$0xff] %v1700_v24  ;;  %v1698_v48 = vadd.f32 %v3409_v15, %v1675_v23 }
 0x2d4   : > { %1714 = vst [vmem:[%s3412_s29 + $0x68] sm:$0xff] %v1698_v48 }
 0x2d5   : > { %2253 = shalt.err (!%p2250_p3)
}
 0x2d6   : > { %s2254_s26 = scalar_lea.hbm %s3463_s7, 2048  ;;  %s2258_s20 = scalar_lea.hbm %s3518_s3, 8192 }
 0x2d7   : > { %p2255_p5 = scmp.ne.s32.totalorder %s3463_s7, %s2254_s26  ;;  %p2259_p6 = scmp.lt.s32.totalorder %s3463_s7, %s3518_s3 }
 0x2d8   : > { %p2260_p11 = scmp.lt.s32.totalorder %s2258_s20, %s2254_s26 }
 0x2d9   : > { %p2256_p7 = pnand %p2255_p5, %p3562_p4 }
 0x2da   : > { %p2261_p10 = por %p2260_p11, %p2259_p6 }
 0x2db   : > { %p2257_p9 = pneg %p2256_p7 }
 0x2dd   : > { %p2262_p1 = pnand %p2261_p10, %p2257_p9 }
 0x2df   : > { %2265 = shalt.err (!%p2262_p1)
}
 0x2e0   : > { %s2333_s29 = smov 128   ;;  %s2334_s4 = smov 8  }
 0x2e1   : > { %2053 = dma.vmem_to_hbm [thread:$0]  (%p3562_p4), %s3465_s21, 2048, %s3463_s7, %s1718_s15, %s2333_s29, %s2333_s29, %s2334_s4  }
 0x2e2 PF: > { %p2070_p8 = scmp.ge.s32.totalorder %s2324_s17, 2  ;;  %s1749_s5 = sand.u32 1, %s2304_s12  }
 0x2e3   : > { %p3563_p12 = scmp.ne.s32.totalorder %s3530_s23, 0  ;;  %s1750_s6 = scalar_lea.sflag [#allocation4], %s1749_s5 }
 0x2e5   : > { %p2064_p13 = pnand %p2070_p8, %p3563_p12 }
 0x2e7   : > { %p2065_p0 = pneg %p2064_p13 }
 0x2e9   : > { %2299 = dma.done.wait (%p2065_p0), %s1750_s6, 2048  }
 0x2ea   : > { %2301 = vsyncadd (%p2065_p0), %s1750_s6, 4294965248  ;;  %s20_s17 = sadd.s32 1, %s2324_s17   ;;  %s3564_s12 = smov %s2308_s13 }
 0x2eb   : > { %p17_p2 = scmp.ge.s32.totalorder %s20_s17, 6   ;;  %s3565_s13 = smov %s2312_s14 }
 0x2ec   : > { %s3566_s14 = smov %s2450_s19  ;;  %s3567_s15 = smov %s2320_s16 }
 0x2ed   : > { %s3568_s16 = smov %s3570_s28  ;;  %19 = sbr.rel (!%p17_p2) target bundleno = 7 (0x7), region = 84 }
 0x2f2   :  { %1755 = vsyncpa [#allocation3], 1 }
 0x2f3   :  { %1757 = vsyncpa [#allocation3 + $0x1], 1 }
 0x2f4   :  { %1758 = vsyncpa [#allocation6], 1 }
 0x2f5   :  { %1759 = vsyncpa [#allocation4], 1 }
 0x2f6   :  { %1761 = vsyncpa [#allocation4 + $0x1], 1 }

</bundles_post_ra>
